<compile_context>
chip_gen: v5e
topology: v5e:2x2
jax: 0.10.0
libtpu: 0.0.40
codegen_flags: <defaults>
</compile_context>

<pallas_src>
import jax
import jax.numpy as jnp
from jax import lax
from jax.experimental import pallas as pl
from jax.experimental.pallas import tpu as pltpu

# ---- model sizes (match the PyTorch module; small synthetic config) ----
LSTM_INPUT = 6         # len(time_series_columns)
IN_PAD = 8             # x padded: 6 features + ones (bias) column + zero column
LSTM_HIDDEN = 64
NUM_STATIC = 4         # num_static_features (synthetic)
STATIC_PAD = 8
FC_HIDDEN = 32
FC1_OUT = 64
OUTPUT_SIZE = 5        # len(target_columns) (synthetic)
OUT_PAD = 128          # lane-dense padded output width
GATES = 4 * LSTM_HIDDEN

BATCH = 8              # multiple of 8 -> full f32 sublane occupancy
SEQ = 8

# ---- row offsets inside the packed weight slab (all lane-padded to 256) ----
R_IH = 0                                   # (IN_PAD, 4H): rows 0..5 w_ih, row 6 b_lstm, row 7 zeros
R_HH = R_IH + IN_PAD                       # (H, 4H)
R_S = R_HH + LSTM_HIDDEN                   # (STATIC_PAD, FC_HIDDEN) zero-padded
R_W1 = R_S + STATIC_PAD                    # (H + FC_HIDDEN, FC1_OUT) zero-padded
R_W2 = R_W1 + LSTM_HIDDEN + FC_HIDDEN      # (FC1_OUT, OUT_PAD) zero-padded
W_ROWS = R_W2 + FC1_OUT                    # 240
W_COLS = GATES                             # 256


def combined_kernel(x_ref, static_ref, w_ref, b_ref, out_ref, xw_ref):
    """Full forward pass of CombinedModel (single grid point, refs in VMEM).

    x_ref      : (SEQ*B, IN_PAD)   time-major flattened; col 6 == 1.0 (bias), col 7 == 0
    static_ref : (B, STATIC_PAD)   zero-padded past NUM_STATIC
    w_ref      : (W_ROWS, W_COLS)  packed weight slab, gate order [i, f, o, g]
    b_ref      : (3, OUT_PAD)      row0=b_s, row1=b1, row2=b2 (zero-padded)
    out_ref    : (B, OUT_PAD)
    xw_ref     : (SEQ*B, 4H)       VMEM scratch for the hoisted input projection
    """
    B = static_ref.shape[0]
    S = x_ref.shape[0] // B
    H = LSTM_HIDDEN

    w_hh = w_ref[R_HH:R_HH + H, :]                            # (H, 4H), kept resident
    # TODO(synk): optionally drive the MXU explicitly (pltpu.matmul_push_rhs /
    # matmul_acc_lhs / matmul_pop) to guarantee w_hh stays pushed across steps.

    # Hoisted input projection for ALL timesteps; bias folded in via the ones
    # column of x.  Staged in VMEM scratch to bound live vregs over the loop.
    xw_ref[...] = jnp.dot(x_ref[...], w_ref[R_IH:R_IH + IN_PAD, :],
                          preferred_element_type=jnp.float32)  # (S*B, 4H)

    h = jnp.zeros((B, H), jnp.float32)
    c = jnp.zeros((B, H), jnp.float32)

    # Fully unrolled recurrence (static trip count, sublane-aligned slices).
    # Gate layout [i, f, o, g]: one contiguous sigmoid over 3H lanes + one tanh.
    for t in range(S):
        gates = xw_ref[t * B:(t + 1) * B, :] + jnp.dot(
            h, w_hh, preferred_element_type=jnp.float32)      # (B, 4H)
        sig = jax.nn.sigmoid(gates[:, 0:3 * H])               # i, f, o
        g_g = jnp.tanh(gates[:, 3 * H:4 * H])
        i_g = sig[:, 0 * H:1 * H]
        f_g = sig[:, 1 * H:2 * H]
        o_g = sig[:, 2 * H:3 * H]
        c = f_g * c + i_g * g_g
        h = o_g * jnp.tanh(c)                                 # lstm_out[:, -1, :]

    # static branch: relu(Linear(static))
    static_out = jnp.maximum(
        jnp.dot(static_ref[...], w_ref[R_S:R_S + STATIC_PAD, 0:FC_HIDDEN],
                preferred_element_type=jnp.float32)
        + b_ref[0:1, 0:FC_HIDDEN], 0.0)                       # (B, FC_HIDDEN)

    # fc1 on concat([h, static_out]) == split-matmul (no in-kernel concat)
    z1 = (jnp.dot(h, w_ref[R_W1:R_W1 + H, 0:FC1_OUT],
                  preferred_element_type=jnp.float32)
          + jnp.dot(static_out, w_ref[R_W1 + H:R_W1 + H + FC_HIDDEN, 0:FC1_OUT],
                    preferred_element_type=jnp.float32)
          + b_ref[1:2, 0:FC1_OUT])
    x1 = jnp.maximum(z1, 0.0)                                 # (B, 64)

    # fc2 -> lane-dense (B, 128) store; real outputs in the first OUTPUT_SIZE lanes.
    out_ref[...] = (jnp.dot(x1, w_ref[R_W2:R_W2 + FC1_OUT, 0:OUT_PAD],
                            preferred_element_type=jnp.float32)
                    + b_ref[2:3, :])


def pack_params(p):
    """One-time packing: gate permutation, bias folding, padding, slab layout."""
    H = LSTM_HIDDEN
    # PyTorch/reference gate order [i, f, g, o] -> kernel order [i, f, o, g]
    perm = jnp.concatenate([jnp.arange(0, 2 * H),
                            jnp.arange(3 * H, 4 * H),
                            jnp.arange(2 * H, 3 * H)])
    w_ih = p["w_ih"][:, perm]
    w_hh = p["w_hh"][:, perm]
    b_lstm = p["b_lstm"][:, perm]

    w = jnp.zeros((W_ROWS, W_COLS), jnp.float32)
    w = w.at[R_IH:R_IH + LSTM_INPUT, :].set(w_ih)
    w = w.at[R_IH + LSTM_INPUT, :].set(b_lstm[0])             # bias row (ones column of x)
    w = w.at[R_HH:R_HH + H, :].set(w_hh)
    w = w.at[R_S:R_S + NUM_STATIC, :FC_HIDDEN].set(p["w_s"])
    w = w.at[R_W1:R_W1 + H + FC_HIDDEN, :FC1_OUT].set(p["w1"])
    w = w.at[R_W2:R_W2 + FC1_OUT, :OUTPUT_SIZE].set(p["w2"])

    b = jnp.zeros((3, OUT_PAD), jnp.float32)
    b = b.at[0, :FC_HIDDEN].set(p["b_s"][0])
    b = b.at[1, :FC1_OUT].set(p["b1"][0])
    b = b.at[2, :OUTPUT_SIZE].set(p["b2"][0])
    return {"w": w, "b": b}


@jax.jit
def combined_model_forward(time_series_data, static_data, packed):
    """time_series_data: (batch, seq, lstm_input) — PyTorch batch_first layout."""
    B, S, I = time_series_data.shape

    # Pad batch to a multiple of 8 for full sublane occupancy (rows discarded).
    B_pad = max(8, ((B + 7) // 8) * 8)
    ts, st = time_series_data, static_data
    if B_pad != B:
        ts = jnp.pad(ts, ((0, B_pad - B), (0, 0), (0, 0)))
        st = jnp.pad(st, ((0, B_pad - B), (0, 0)))

    # Time-major + ones column (folds b_lstm) + zero pad to IN_PAD lanes.
    x_tm = jnp.transpose(ts, (1, 0, 2))                       # (S, B_pad, I)
    ones = jnp.ones((S, B_pad, 1), jnp.float32)
    zeros = jnp.zeros((S, B_pad, IN_PAD - I - 1), jnp.float32)
    x_flat = jnp.concatenate([x_tm, ones, zeros], axis=-1).reshape(S * B_pad, IN_PAD)

    st_pad = jnp.pad(st, ((0, 0), (0, STATIC_PAD - st.shape[1])))

    vmem = pl.BlockSpec(memory_space=pltpu.MemorySpace.VMEM)
    out_padded = pl.pallas_call(
        combined_kernel,
        out_shape=jax.ShapeDtypeStruct((B_pad, OUT_PAD), jnp.float32),
        in_specs=[vmem, vmem, vmem, vmem],
        out_specs=vmem,
        scratch_shapes=[pltpu.VMEM((S * B_pad, GATES), jnp.float32)],
    )(x_flat, st_pad, packed["w"], packed["b"])

    return out_padded[:B, :OUTPUT_SIZE]


def init_params(key):
    ks = jax.random.split(key, 10)
    s = 0.1
    H, I, F = LSTM_HIDDEN, LSTM_INPUT, NUM_STATIC
    return {
        # LSTM (gate order i, f, g, o) — stored pre-transposed (in_dim, 4H)
        "w_ih": s * jax.random.normal(ks[0], (I, 4 * H), jnp.float32),
        "w_hh": s * jax.random.normal(ks[1], (H, 4 * H), jnp.float32),
        "b_lstm": (s * jax.random.normal(ks[2], (1, 4 * H), jnp.float32)
                   + s * jax.random.normal(ks[3], (1, 4 * H), jnp.float32)),
        # fc_static
        "w_s": s * jax.random.normal(ks[4], (F, FC_HIDDEN), jnp.float32),
        "b_s": s * jax.random.normal(ks[5], (1, FC_HIDDEN), jnp.float32),
        # fc1 on concat([lstm_out, static_out]) : (H + FC_HIDDEN, 64)
        "w1": s * jax.random.normal(ks[6], (H + FC_HIDDEN, FC1_OUT), jnp.float32),
        "b1": s * jax.random.normal(ks[7], (1, FC1_OUT), jnp.float32),
        # fc2
        "w2": s * jax.random.normal(ks[8], (FC1_OUT, OUTPUT_SIZE), jnp.float32),
        "b2": s * jax.random.normal(ks[9], (1, OUTPUT_SIZE), jnp.float32),
    }


def reference_forward(x, static, p):
    """Pure-JAX reference mirroring PyTorch nn.LSTM + Linear semantics."""
    B = x.shape[0]
    H = LSTM_HIDDEN

    def step(carry, x_t):
        h, c = carry
        gates = x_t @ p["w_ih"] + h @ p["w_hh"] + p["b_lstm"]
        i_g = jax.nn.sigmoid(gates[:, 0 * H:1 * H])
        f_g = jax.nn.sigmoid(gates[:, 1 * H:2 * H])
        g_g = jnp.tanh(gates[:, 2 * H:3 * H])
        o_g = jax.nn.sigmoid(gates[:, 3 * H:4 * H])
        c = f_g * c + i_g * g_g
        h = o_g * jnp.tanh(c)
        return (h, c), None

    (h, _), _ = lax.scan(step,
                         (jnp.zeros((B, H)), jnp.zeros((B, H))),
                         jnp.transpose(x, (1, 0, 2)))
    static_out = jax.nn.relu(static @ p["w_s"] + p["b_s"])
    combined = jnp.concatenate([h, static_out], axis=1)
    x1 = jax.nn.relu(combined @ p["w1"] + p["b1"])
    return x1 @ p["w2"] + p["b2"]


if __name__ == "__main__":
    key = jax.random.PRNGKey(0)
    k_x, k_s, k_p = jax.random.split(key, 3)

    time_series_data = jax.random.normal(k_x, (BATCH, SEQ, LSTM_INPUT), jnp.float32)
    static_data = jax.random.normal(k_s, (BATCH, NUM_STATIC), jnp.float32)
    params = init_params(k_p)
    packed = jax.tree_util.tree_map(jax.block_until_ready, pack_params(params))

    out = combined_model_forward(time_series_data, static_data, packed)
    out = jax.block_until_ready(out)

    ref = reference_forward(time_series_data, static_data, params)
    assert out.shape == (BATCH, OUTPUT_SIZE)
    assert jnp.allclose(out, ref, atol=1e-4, rtol=1e-4), (out, ref)

    print("KERNEL_OK")
</pallas_src>

<mosaic_0001>
module attributes {stable_mosaic.version = 11 : i64} {
  func.func @combined_kernel(%arg0: memref<64x8xf32, #tpu.memory_space<vmem>>, %arg1: memref<8x8xf32, #tpu.memory_space<vmem>>, %arg2: memref<240x256xf32, #tpu.memory_space<vmem>>, %arg3: memref<3x128xf32, #tpu.memory_space<vmem>>, %arg4: memref<8x128xf32, #tpu.memory_space<vmem>>, %arg5: memref<64x256xf32, #tpu.memory_space<vmem>>) attributes {dimension_semantics = [], scalar_prefetch = 0 : i64, scratch_operands = 1 : i64, tpu.core_type = #tpu.core_type<tc>} {
    %c8 = arith.constant 8 : index
    %c0 = arith.constant 0 : index
    %0 = vector.load %arg2[%c8, %c0] : memref<240x256xf32, #tpu.memory_space<vmem>>, vector<64x256xf32>
    %c0_0 = arith.constant 0 : index
    %c0_1 = arith.constant 0 : index
    %1 = vector.load %arg0[%c0_0, %c0_1] : memref<64x8xf32, #tpu.memory_space<vmem>>, vector<64x8xf32>
    %c0_2 = arith.constant 0 : index
    %c0_3 = arith.constant 0 : index
    %2 = vector.load %arg2[%c0_2, %c0_3] : memref<240x256xf32, #tpu.memory_space<vmem>>, vector<8x256xf32>
    %cst = arith.constant dense<0.000000e+00> : vector<64x256xf32>
    %3 = tpu.matmul %1, %2, %cst {dimension_numbers = #tpu.dot_dimension_numbers<[1], [0], [0], [1], [0, 0, 1, 1], [], []>} : vector<64x8xf32>, vector<8x256xf32>, vector<64x256xf32> -> vector<64x256xf32>
    %c0_4 = arith.constant 0 : index
    %c0_5 = arith.constant 0 : index
    %4 = vector.load %arg5[%c0_4, %c0_5] : memref<64x256xf32, #tpu.memory_space<vmem>>, vector<64x256xf32>
    tpu.vector_store %arg5[%c0_4, %c0_5], %3 {strides = array<i32>} : memref<64x256xf32, #tpu.memory_space<vmem>>, vector<64x256xf32>,
    %cst_6 = arith.constant 0.000000e+00 : f32
    %5 = vector.broadcast %cst_6 : f32 to vector<8x64xf32>
    %cst_7 = arith.constant 0.000000e+00 : f32
    %6 = vector.broadcast %cst_7 : f32 to vector<8x64xf32>
    %c0_8 = arith.constant 0 : index
    %c0_9 = arith.constant 0 : index
    %7 = vector.load %arg5[%c0_8, %c0_9] : memref<64x256xf32, #tpu.memory_space<vmem>>, vector<8x256xf32>
    %cst_10 = arith.constant dense<0.000000e+00> : vector<8x256xf32>
    %8 = tpu.matmul %5, %0, %cst_10 {dimension_numbers = #tpu.dot_dimension_numbers<[1], [0], [0], [1], [0, 0, 1, 1], [], []>} : vector<8x64xf32>, vector<64x256xf32>, vector<8x256xf32> -> vector<8x256xf32>
    %9 = arith.addf %7, %8 : vector<8x256xf32>
    %10 = vector.extract_strided_slice %9 {offsets = [0, 0], sizes = [8, 192], strides = [1, 1]} : vector<8x256xf32> to vector<8x192xf32>
    %11 = arith.negf %10 : vector<8x192xf32>
    %12 = math.exp %11 : vector<8x192xf32>
    %cst_11 = arith.constant 1.000000e+00 : f32
    %13 = vector.broadcast %cst_11 : f32 to vector<8x192xf32>
    %14 = arith.addf %13, %12 : vector<8x192xf32>
    %15 = arith.divf %13, %14 : vector<8x192xf32>
    %16 = vector.extract_strided_slice %9 {offsets = [0, 192], sizes = [8, 64], strides = [1, 1]} : vector<8x256xf32> to vector<8x64xf32>
    %17 = math.tanh %16 : vector<8x64xf32>
    %18 = vector.extract_strided_slice %15 {offsets = [0, 0], sizes = [8, 64], strides = [1, 1]} : vector<8x192xf32> to vector<8x64xf32>
    %19 = vector.extract_strided_slice %15 {offsets = [0, 64], sizes = [8, 64], strides = [1, 1]} : vector<8x192xf32> to vector<8x64xf32>
    %20 = vector.extract_strided_slice %15 {offsets = [0, 128], sizes = [8, 64], strides = [1, 1]} : vector<8x192xf32> to vector<8x64xf32>
    %21 = arith.mulf %19, %6 : vector<8x64xf32>
    %22 = arith.mulf %18, %17 : vector<8x64xf32>
    %23 = arith.addf %21, %22 : vector<8x64xf32>
    %24 = math.tanh %23 : vector<8x64xf32>
    %25 = arith.mulf %20, %24 : vector<8x64xf32>
    %c8_12 = arith.constant 8 : index
    %c0_13 = arith.constant 0 : index
    %26 = vector.load %arg5[%c8_12, %c0_13] : memref<64x256xf32, #tpu.memory_space<vmem>>, vector<8x256xf32>
    %cst_14 = arith.constant dense<0.000000e+00> : vector<8x256xf32>
    %27 = tpu.matmul %25, %0, %cst_14 {dimension_numbers = #tpu.dot_dimension_numbers<[1], [0], [0], [1], [0, 0, 1, 1], [], []>} : vector<8x64xf32>, vector<64x256xf32>, vector<8x256xf32> -> vector<8x256xf32>
    %28 = arith.addf %26, %27 : vector<8x256xf32>
    %29 = vector.extract_strided_slice %28 {offsets = [0, 0], sizes = [8, 192], strides = [1, 1]} : vector<8x256xf32> to vector<8x192xf32>
    %30 = arith.negf %29 : vector<8x192xf32>
    %31 = math.exp %30 : vector<8x192xf32>
    %cst_15 = arith.constant 1.000000e+00 : f32
    %32 = vector.broadcast %cst_15 : f32 to vector<8x192xf32>
    %33 = arith.addf %32, %31 : vector<8x192xf32>
    %34 = arith.divf %32, %33 : vector<8x192xf32>
    %35 = vector.extract_strided_slice %28 {offsets = [0, 192], sizes = [8, 64], strides = [1, 1]} : vector<8x256xf32> to vector<8x64xf32>
    %36 = math.tanh %35 : vector<8x64xf32>
    %37 = vector.extract_strided_slice %34 {offsets = [0, 0], sizes = [8, 64], strides = [1, 1]} : vector<8x192xf32> to vector<8x64xf32>
    %38 = vector.extract_strided_slice %34 {offsets = [0, 64], sizes = [8, 64], strides = [1, 1]} : vector<8x192xf32> to vector<8x64xf32>
    %39 = vector.extract_strided_slice %34 {offsets = [0, 128], sizes = [8, 64], strides = [1, 1]} : vector<8x192xf32> to vector<8x64xf32>
    %40 = arith.mulf %38, %23 : vector<8x64xf32>
    %41 = arith.mulf %37, %36 : vector<8x64xf32>
    %42 = arith.addf %40, %41 : vector<8x64xf32>
    %43 = math.tanh %42 : vector<8x64xf32>
    %44 = arith.mulf %39, %43 : vector<8x64xf32>
    %c16 = arith.constant 16 : index
    %c0_16 = arith.constant 0 : index
    %45 = vector.load %arg5[%c16, %c0_16] : memref<64x256xf32, #tpu.memory_space<vmem>>, vector<8x256xf32>
    %cst_17 = arith.constant dense<0.000000e+00> : vector<8x256xf32>
    %46 = tpu.matmul %44, %0, %cst_17 {dimension_numbers = #tpu.dot_dimension_numbers<[1], [0], [0], [1], [0, 0, 1, 1], [], []>} : vector<8x64xf32>, vector<64x256xf32>, vector<8x256xf32> -> vector<8x256xf32>
    %47 = arith.addf %45, %46 : vector<8x256xf32>
    %48 = vector.extract_strided_slice %47 {offsets = [0, 0], sizes = [8, 192], strides = [1, 1]} : vector<8x256xf32> to vector<8x192xf32>
    %49 = arith.negf %48 : vector<8x192xf32>
    %50 = math.exp %49 : vector<8x192xf32>
    %cst_18 = arith.constant 1.000000e+00 : f32
    %51 = vector.broadcast %cst_18 : f32 to vector<8x192xf32>
    %52 = arith.addf %51, %50 : vector<8x192xf32>
    %53 = arith.divf %51, %52 : vector<8x192xf32>
    %54 = vector.extract_strided_slice %47 {offsets = [0, 192], sizes = [8, 64], strides = [1, 1]} : vector<8x256xf32> to vector<8x64xf32>
    %55 = math.tanh %54 : vector<8x64xf32>
    %56 = vector.extract_strided_slice %53 {offsets = [0, 0], sizes = [8, 64], strides = [1, 1]} : vector<8x192xf32> to vector<8x64xf32>
    %57 = vector.extract_strided_slice %53 {offsets = [0, 64], sizes = [8, 64], strides = [1, 1]} : vector<8x192xf32> to vector<8x64xf32>
    %58 = vector.extract_strided_slice %53 {offsets = [0, 128], sizes = [8, 64], strides = [1, 1]} : vector<8x192xf32> to vector<8x64xf32>
    %59 = arith.mulf %57, %42 : vector<8x64xf32>
    %60 = arith.mulf %56, %55 : vector<8x64xf32>
    %61 = arith.addf %59, %60 : vector<8x64xf32>
    %62 = math.tanh %61 : vector<8x64xf32>
    %63 = arith.mulf %58, %62 : vector<8x64xf32>
    %c24 = arith.constant 24 : index
    %c0_19 = arith.constant 0 : index
    %64 = vector.load %arg5[%c24, %c0_19] : memref<64x256xf32, #tpu.memory_space<vmem>>, vector<8x256xf32>
    %cst_20 = arith.constant dense<0.000000e+00> : vector<8x256xf32>
    %65 = tpu.matmul %63, %0, %cst_20 {dimension_numbers = #tpu.dot_dimension_numbers<[1], [0], [0], [1], [0, 0, 1, 1], [], []>} : vector<8x64xf32>, vector<64x256xf32>, vector<8x256xf32> -> vector<8x256xf32>
    %66 = arith.addf %64, %65 : vector<8x256xf32>
    %67 = vector.extract_strided_slice %66 {offsets = [0, 0], sizes = [8, 192], strides = [1, 1]} : vector<8x256xf32> to vector<8x192xf32>
    %68 = arith.negf %67 : vector<8x192xf32>
    %69 = math.exp %68 : vector<8x192xf32>
    %cst_21 = arith.constant 1.000000e+00 : f32
    %70 = vector.broadcast %cst_21 : f32 to vector<8x192xf32>
    %71 = arith.addf %70, %69 : vector<8x192xf32>
    %72 = arith.divf %70, %71 : vector<8x192xf32>
    %73 = vector.extract_strided_slice %66 {offsets = [0, 192], sizes = [8, 64], strides = [1, 1]} : vector<8x256xf32> to vector<8x64xf32>
    %74 = math.tanh %73 : vector<8x64xf32>
    %75 = vector.extract_strided_slice %72 {offsets = [0, 0], sizes = [8, 64], strides = [1, 1]} : vector<8x192xf32> to vector<8x64xf32>
    %76 = vector.extract_strided_slice %72 {offsets = [0, 64], sizes = [8, 64], strides = [1, 1]} : vector<8x192xf32> to vector<8x64xf32>
    %77 = vector.extract_strided_slice %72 {offsets = [0, 128], sizes = [8, 64], strides = [1, 1]} : vector<8x192xf32> to vector<8x64xf32>
    %78 = arith.mulf %76, %61 : vector<8x64xf32>
    %79 = arith.mulf %75, %74 : vector<8x64xf32>
    %80 = arith.addf %78, %79 : vector<8x64xf32>
    %81 = math.tanh %80 : vector<8x64xf32>
    %82 = arith.mulf %77, %81 : vector<8x64xf32>
    %c32 = arith.constant 32 : index
    %c0_22 = arith.constant 0 : index
    %83 = vector.load %arg5[%c32, %c0_22] : memref<64x256xf32, #tpu.memory_space<vmem>>, vector<8x256xf32>
    %cst_23 = arith.constant dense<0.000000e+00> : vector<8x256xf32>
    %84 = tpu.matmul %82, %0, %cst_23 {dimension_numbers = #tpu.dot_dimension_numbers<[1], [0], [0], [1], [0, 0, 1, 1], [], []>} : vector<8x64xf32>, vector<64x256xf32>, vector<8x256xf32> -> vector<8x256xf32>
    %85 = arith.addf %83, %84 : vector<8x256xf32>
    %86 = vector.extract_strided_slice %85 {offsets = [0, 0], sizes = [8, 192], strides = [1, 1]} : vector<8x256xf32> to vector<8x192xf32>
    %87 = arith.negf %86 : vector<8x192xf32>
    %88 = math.exp %87 : vector<8x192xf32>
    %cst_24 = arith.constant 1.000000e+00 : f32
    %89 = vector.broadcast %cst_24 : f32 to vector<8x192xf32>
    %90 = arith.addf %89, %88 : vector<8x192xf32>
    %91 = arith.divf %89, %90 : vector<8x192xf32>
    %92 = vector.extract_strided_slice %85 {offsets = [0, 192], sizes = [8, 64], strides = [1, 1]} : vector<8x256xf32> to vector<8x64xf32>
    %93 = math.tanh %92 : vector<8x64xf32>
    %94 = vector.extract_strided_slice %91 {offsets = [0, 0], sizes = [8, 64], strides = [1, 1]} : vector<8x192xf32> to vector<8x64xf32>
    %95 = vector.extract_strided_slice %91 {offsets = [0, 64], sizes = [8, 64], strides = [1, 1]} : vector<8x192xf32> to vector<8x64xf32>
    %96 = vector.extract_strided_slice %91 {offsets = [0, 128], sizes = [8, 64], strides = [1, 1]} : vector<8x192xf32> to vector<8x64xf32>
    %97 = arith.mulf %95, %80 : vector<8x64xf32>
    %98 = arith.mulf %94, %93 : vector<8x64xf32>
    %99 = arith.addf %97, %98 : vector<8x64xf32>
    %100 = math.tanh %99 : vector<8x64xf32>
    %101 = arith.mulf %96, %100 : vector<8x64xf32>
    %c40 = arith.constant 40 : index
    %c0_25 = arith.constant 0 : index
    %102 = vector.load %arg5[%c40, %c0_25] : memref<64x256xf32, #tpu.memory_space<vmem>>, vector<8x256xf32>
    %cst_26 = arith.constant dense<0.000000e+00> : vector<8x256xf32>
    %103 = tpu.matmul %101, %0, %cst_26 {dimension_numbers = #tpu.dot_dimension_numbers<[1], [0], [0], [1], [0, 0, 1, 1], [], []>} : vector<8x64xf32>, vector<64x256xf32>, vector<8x256xf32> -> vector<8x256xf32>
    %104 = arith.addf %102, %103 : vector<8x256xf32>
    %105 = vector.extract_strided_slice %104 {offsets = [0, 0], sizes = [8, 192], strides = [1, 1]} : vector<8x256xf32> to vector<8x192xf32>
    %106 = arith.negf %105 : vector<8x192xf32>
    %107 = math.exp %106 : vector<8x192xf32>
    %cst_27 = arith.constant 1.000000e+00 : f32
    %108 = vector.broadcast %cst_27 : f32 to vector<8x192xf32>
    %109 = arith.addf %108, %107 : vector<8x192xf32>
    %110 = arith.divf %108, %109 : vector<8x192xf32>
    %111 = vector.extract_strided_slice %104 {offsets = [0, 192], sizes = [8, 64], strides = [1, 1]} : vector<8x256xf32> to vector<8x64xf32>
    %112 = math.tanh %111 : vector<8x64xf32>
    %113 = vector.extract_strided_slice %110 {offsets = [0, 0], sizes = [8, 64], strides = [1, 1]} : vector<8x192xf32> to vector<8x64xf32>
    %114 = vector.extract_strided_slice %110 {offsets = [0, 64], sizes = [8, 64], strides = [1, 1]} : vector<8x192xf32> to vector<8x64xf32>
    %115 = vector.extract_strided_slice %110 {offsets = [0, 128], sizes = [8, 64], strides = [1, 1]} : vector<8x192xf32> to vector<8x64xf32>
    %116 = arith.mulf %114, %99 : vector<8x64xf32>
    %117 = arith.mulf %113, %112 : vector<8x64xf32>
    %118 = arith.addf %116, %117 : vector<8x64xf32>
    %119 = math.tanh %118 : vector<8x64xf32>
    %120 = arith.mulf %115, %119 : vector<8x64xf32>
    %c48 = arith.constant 48 : index
    %c0_28 = arith.constant 0 : index
    %121 = vector.load %arg5[%c48, %c0_28] : memref<64x256xf32, #tpu.memory_space<vmem>>, vector<8x256xf32>
    %cst_29 = arith.constant dense<0.000000e+00> : vector<8x256xf32>
    %122 = tpu.matmul %120, %0, %cst_29 {dimension_numbers = #tpu.dot_dimension_numbers<[1], [0], [0], [1], [0, 0, 1, 1], [], []>} : vector<8x64xf32>, vector<64x256xf32>, vector<8x256xf32> -> vector<8x256xf32>
    %123 = arith.addf %121, %122 : vector<8x256xf32>
    %124 = vector.extract_strided_slice %123 {offsets = [0, 0], sizes = [8, 192], strides = [1, 1]} : vector<8x256xf32> to vector<8x192xf32>
    %125 = arith.negf %124 : vector<8x192xf32>
    %126 = math.exp %125 : vector<8x192xf32>
    %cst_30 = arith.constant 1.000000e+00 : f32
    %127 = vector.broadcast %cst_30 : f32 to vector<8x192xf32>
    %128 = arith.addf %127, %126 : vector<8x192xf32>
    %129 = arith.divf %127, %128 : vector<8x192xf32>
    %130 = vector.extract_strided_slice %123 {offsets = [0, 192], sizes = [8, 64], strides = [1, 1]} : vector<8x256xf32> to vector<8x64xf32>
    %131 = math.tanh %130 : vector<8x64xf32>
    %132 = vector.extract_strided_slice %129 {offsets = [0, 0], sizes = [8, 64], strides = [1, 1]} : vector<8x192xf32> to vector<8x64xf32>
    %133 = vector.extract_strided_slice %129 {offsets = [0, 64], sizes = [8, 64], strides = [1, 1]} : vector<8x192xf32> to vector<8x64xf32>
    %134 = vector.extract_strided_slice %129 {offsets = [0, 128], sizes = [8, 64], strides = [1, 1]} : vector<8x192xf32> to vector<8x64xf32>
    %135 = arith.mulf %133, %118 : vector<8x64xf32>
    %136 = arith.mulf %132, %131 : vector<8x64xf32>
    %137 = arith.addf %135, %136 : vector<8x64xf32>
    %138 = math.tanh %137 : vector<8x64xf32>
    %139 = arith.mulf %134, %138 : vector<8x64xf32>
    %c56 = arith.constant 56 : index
    %c0_31 = arith.constant 0 : index
    %140 = vector.load %arg5[%c56, %c0_31] : memref<64x256xf32, #tpu.memory_space<vmem>>, vector<8x256xf32>
    %cst_32 = arith.constant dense<0.000000e+00> : vector<8x256xf32>
    %141 = tpu.matmul %139, %0, %cst_32 {dimension_numbers = #tpu.dot_dimension_numbers<[1], [0], [0], [1], [0, 0, 1, 1], [], []>} : vector<8x64xf32>, vector<64x256xf32>, vector<8x256xf32> -> vector<8x256xf32>
    %142 = arith.addf %140, %141 : vector<8x256xf32>
    %143 = vector.extract_strided_slice %142 {offsets = [0, 0], sizes = [8, 192], strides = [1, 1]} : vector<8x256xf32> to vector<8x192xf32>
    %144 = arith.negf %143 : vector<8x192xf32>
    %145 = math.exp %144 : vector<8x192xf32>
    %cst_33 = arith.constant 1.000000e+00 : f32
    %146 = vector.broadcast %cst_33 : f32 to vector<8x192xf32>
    %147 = arith.addf %146, %145 : vector<8x192xf32>
    %148 = arith.divf %146, %147 : vector<8x192xf32>
    %149 = vector.extract_strided_slice %142 {offsets = [0, 192], sizes = [8, 64], strides = [1, 1]} : vector<8x256xf32> to vector<8x64xf32>
    %150 = math.tanh %149 : vector<8x64xf32>
    %151 = vector.extract_strided_slice %148 {offsets = [0, 0], sizes = [8, 64], strides = [1, 1]} : vector<8x192xf32> to vector<8x64xf32>
    %152 = vector.extract_strided_slice %148 {offsets = [0, 64], sizes = [8, 64], strides = [1, 1]} : vector<8x192xf32> to vector<8x64xf32>
    %153 = vector.extract_strided_slice %148 {offsets = [0, 128], sizes = [8, 64], strides = [1, 1]} : vector<8x192xf32> to vector<8x64xf32>
    %154 = arith.mulf %152, %137 : vector<8x64xf32>
    %155 = arith.mulf %151, %150 : vector<8x64xf32>
    %156 = arith.addf %154, %155 : vector<8x64xf32>
    %157 = math.tanh %156 : vector<8x64xf32>
    %158 = arith.mulf %153, %157 : vector<8x64xf32>
    %c0_34 = arith.constant 0 : index
    %c0_35 = arith.constant 0 : index
    %159 = vector.load %arg1[%c0_34, %c0_35] : memref<8x8xf32, #tpu.memory_space<vmem>>, vector<8x8xf32>
    %c72 = arith.constant 72 : index
    %c0_36 = arith.constant 0 : index
    %160 = vector.load %arg2[%c72, %c0_36] : memref<240x256xf32, #tpu.memory_space<vmem>>, vector<8x32xf32>
    %cst_37 = arith.constant dense<0.000000e+00> : vector<8x32xf32>
    %161 = tpu.matmul %159, %160, %cst_37 {dimension_numbers = #tpu.dot_dimension_numbers<[1], [0], [0], [1], [0, 0, 1, 1], [], []>} : vector<8x8xf32>, vector<8x32xf32>, vector<8x32xf32> -> vector<8x32xf32>
    %c0_38 = arith.constant 0 : index
    %c0_39 = arith.constant 0 : index
    %162 = vector.load %arg3[%c0_38, %c0_39] : memref<3x128xf32, #tpu.memory_space<vmem>>, vector<1x32xf32>
    %163 = vector.broadcast %162 : vector<1x32xf32> to vector<8x32xf32>
    %164 = arith.addf %161, %163 : vector<8x32xf32>
    %cst_40 = arith.constant 0.000000e+00 : f32
    %165 = vector.broadcast %cst_40 : f32 to vector<8x32xf32>
    %166 = arith.maximumf %164, %165 : vector<8x32xf32>
    %c80 = arith.constant 80 : index
    %c0_41 = arith.constant 0 : index
    %167 = vector.load %arg2[%c80, %c0_41] : memref<240x256xf32, #tpu.memory_space<vmem>>, vector<64x64xf32>
    %cst_42 = arith.constant dense<0.000000e+00> : vector<8x64xf32>
    %168 = tpu.matmul %158, %167, %cst_42 {dimension_numbers = #tpu.dot_dimension_numbers<[1], [0], [0], [1], [0, 0, 1, 1], [], []>} : vector<8x64xf32>, vector<64x64xf32>, vector<8x64xf32> -> vector<8x64xf32>
    %c144 = arith.constant 144 : index
    %c0_43 = arith.constant 0 : index
    %169 = vector.load %arg2[%c144, %c0_43] : memref<240x256xf32, #tpu.memory_space<vmem>>, vector<32x64xf32>
    %cst_44 = arith.constant dense<0.000000e+00> : vector<8x64xf32>
    %170 = tpu.matmul %166, %169, %cst_44 {dimension_numbers = #tpu.dot_dimension_numbers<[1], [0], [0], [1], [0, 0, 1, 1], [], []>} : vector<8x32xf32>, vector<32x64xf32>, vector<8x64xf32> -> vector<8x64xf32>
    %171 = arith.addf %168, %170 : vector<8x64xf32>
    %c1 = arith.constant 1 : index
    %c0_45 = arith.constant 0 : index
    %172 = vector.load %arg3[%c1, %c0_45] : memref<3x128xf32, #tpu.memory_space<vmem>>, vector<1x64xf32>
    %173 = vector.broadcast %172 : vector<1x64xf32> to vector<8x64xf32>
    %174 = arith.addf %171, %173 : vector<8x64xf32>
    %cst_46 = arith.constant 0.000000e+00 : f32
    %175 = vector.broadcast %cst_46 : f32 to vector<8x64xf32>
    %176 = arith.maximumf %174, %175 : vector<8x64xf32>
    %c176 = arith.constant 176 : index
    %c0_47 = arith.constant 0 : index
    %177 = vector.load %arg2[%c176, %c0_47] : memref<240x256xf32, #tpu.memory_space<vmem>>, vector<64x128xf32>
    %cst_48 = arith.constant dense<0.000000e+00> : vector<8x128xf32>
    %178 = tpu.matmul %176, %177, %cst_48 {dimension_numbers = #tpu.dot_dimension_numbers<[1], [0], [0], [1], [0, 0, 1, 1], [], []>} : vector<8x64xf32>, vector<64x128xf32>, vector<8x128xf32> -> vector<8x128xf32>
    %c2 = arith.constant 2 : index
    %c0_49 = arith.constant 0 : index
    %179 = vector.load %arg3[%c2, %c0_49] : memref<3x128xf32, #tpu.memory_space<vmem>>, vector<1x128xf32>
    %180 = vector.broadcast %179 : vector<1x128xf32> to vector<8x128xf32>
    %181 = arith.addf %178, %180 : vector<8x128xf32>
    %c0_50 = arith.constant 0 : index
    %c0_51 = arith.constant 0 : index
    %182 = vector.load %arg4[%c0_50, %c0_51] : memref<8x128xf32, #tpu.memory_space<vmem>>, vector<8x128xf32>
    tpu.vector_store %arg4[%c0_50, %c0_51], %181 {strides = array<i32>} : memref<8x128xf32, #tpu.memory_space<vmem>>, vector<8x128xf32>,
    return
  }
}

</mosaic_0001>

<bundles_post_ra>
// kernel: combined_model_forward.1
= control target key start
LH: loop header
LB: loop body
LE: loop exit
PB: predicated region body
PF: predicated region fallthrough
CT: control target
= control target key end

     0   :  { %9 = vsyncpa [#allocation4], 0  ;;  %s1686_s0 = inlined_call_operand.vmem [shape: f32[64,8], index: 0, kind: input, shape index: {}]   ;;  %s1687_s1 = inlined_call_operand.vmem [shape: f32[8,8], index: 1, kind: input, shape index: {}]   ;;  %s1688_s2 = inlined_call_operand.hbm [shape: f32[240,256], index: 2, kind: input, shape index: {}]   ;;  %s1689_s3 = inlined_call_operand.vmem [shape: f32[3,128], index: 3, kind: input, shape index: {}]   ;;  %s1690_s4 = inlined_call_operand.hbm [shape: f32[8,128], index: 4, kind: output, shape index: {}]  }
   0x1   :  { %10 = vsyncpa [#allocation5], 0  ;;  %s19_s17 = sshll.u32 %s1688_s2, 4  ;;  %s1357_s18 = smov [#allocation3]   ;;  %s20_s17 = int_to_ptr.hbm [resolvable:$true] %s19_s17 }
   0x2   :  { %s21_s19 = sshll.u32 %s1357_s18, 4  ;;  %s1358_s20 = smov 256   ;;  %s22_s19 = int_to_ptr.vmem [resolvable:$true] %s21_s19 }
   0x3   :  { %s1359_s21 = smov 16  }
   0x4   :  { %27 = dma.hbm_to_vmem [thread:$0]  %s20_s17, 7680, %s22_s19, [#allocation4], %s1358_s20, %s1358_s20, %s1359_s21  }
   0x5   :  { %1353 = dma.done.wait [#allocation4], 7680  }
   0x6   :  { %1354 = vsyncadd [#allocation4], 4294959616  ;;  %v1391_v0 = vld [vmem:[#allocation3 + $0x88] sm:$0xff]  ;;  %v1393_v1 = vld [vmem:[#allocation3 + $0x78] sm:$0xff]  ;;  %vm60_vm0 = vcmask 64512   ;;  %v1360_v19 = vmov 0.0  }
   0x7   :  { %217 = vmatpush.msra.mxu3 %v1391_v0  ;;  %v1396_v2 = vld [vmem:[#allocation3 + $0x68] sm:$0xff]  ;;  %v50_v4 = vld [vmem:[%s1686_s0] sm:$0xff]  ;;  %v1404_v6 = vld [vmem:[#allocation3 + $0x70] sm:$0xff]  ;;  %s1361_s23 = smov 64   ;;  %vm185_vm9 = vcmask 523264   ;;  %s1362_s18 = smov [#allocation6]  }
   0x8   :  { %v59_v3 = vld [vmem:[#allocation3 + $0x8] sm:$0xff]  ;;  %v1402_v5 = vld [vmem:[#allocation3 + $0x80] sm:$0xff]  ;;  %v1406_v7 = vld [vmem:[#allocation3 + $0x58] sm:$0xff]  ;;  %s1138_s19 = sshll.u32 %s1362_s18, 4  ;;  %s1140_s2 = sshll.u32 %s1690_s4, 4  ;;  %s1139_s19 = int_to_ptr.vmem [resolvable:$true] %s1138_s19  ;;  %s1141_s2 = int_to_ptr.hbm [resolvable:$true] %s1140_s2 }
   0x9   :  { %218 = vmatpush.msra.mxu3 %v1393_v1  ;;  %141 = vmatpush.msra.mxu1 %v59_v3  ;;  %v1411_v8 = vld [vmem:[#allocation3 + $0x48] sm:$0xff]  ;;  %v1413_v9 = vld [vmem:[#allocation3 + $0x60] sm:$0xff]  ;;  %v1418_v11 = vld [vmem:[#allocation3 + $0x50] sm:$0xff] }
   0xa   :  { %1158 = vmatmul.msk.f32.vlgmr.msra.gmra.mxu1 %vm60_vm0, %v50_v4  ;;  %197 = vmatpush.msra.mxu2 %v1402_v5  ;;  %v58_v10 = vld [vmem:[#allocation3] sm:$0xff]  ;;  %v1420_v12 = vld [vmem:[#allocation3 + $0x38] sm:$0xff]  ;;  %v1428_v14 = vld [vmem:[#allocation3 + $0x28] sm:$0xff] }
   0xb   :  { %219 = vmatpush.msra.mxu3 %v1396_v2  ;;  %629 = vmatpush.msrb.mxu1 %v1391_v0  ;;  %v1425_v13 = vld [vmem:[#allocation3 + $0x40] sm:$0xff]  ;;  %v1433_v15 = vld [vmem:[#allocation3 + $0x30] sm:$0xff]  ;;  %v1436_v16 = vld [vmem:[#allocation3 + $0x18] sm:$0xff] }
   0xc   :  { %198 = vmatpush.msra.mxu2 %v1404_v6  ;;  %100 = vmatpush.msra.mxu0 %v58_v10  ;;  %v1441_v17 = vld [vmem:[#allocation3 + $0x20] sm:$0xff]  ;;  %v1447_v18 = vld [vmem:[#allocation3 + $0x10] sm:$0xff]  ;;  %v51_v49 = vld [vmem:[%s1686_s0 + $0x8] sm:$0xff] }
   0xd   :  { %220 = vmatpush.msra.mxu3 %v1406_v7  ;;  %1150 = vmatmul.msk.f32.vlgmr.msra.gmra.mxu0 %vm60_vm0, %v50_v4 }
   0xe   :  { %199 = vmatpush.msra.mxu2 %v1413_v9  ;;  %630 = vmatpush.msrb.mxu1 %v1393_v1 }
   0xf   :  { %221 = vmatpush.msra.mxu3 %v1411_v8  ;;  %609 = vmatpush.msrb.mxu0 %v1402_v5 }
  0x10   :  { %200 = vmatpush.msra.mxu2 %v1418_v11  ;;  %631 = vmatpush.msrb.mxu1 %v1396_v2 }
  0x11   :  { %222 = vmatpush.msra.mxu3 %v1420_v12  ;;  %610 = vmatpush.msrb.mxu0 %v1404_v6 }
  0x12   :  { %201 = vmatpush.msra.mxu2 %v1425_v13  ;;  %632 = vmatpush.msrb.mxu1 %v1406_v7 }
  0x13   :  { %223 = vmatpush.msra.mxu3 %v1428_v14  ;;  %611 = vmatpush.msrb.mxu0 %v1413_v9 }
  0x14   :  { %202 = vmatpush.msra.mxu2 %v1433_v15  ;;  %633 = vmatpush.msrb.mxu1 %v1411_v8 }
  0x15   :  { %224 = vmatpush.msra.mxu3 %v1436_v16  ;;  %612 = vmatpush.msrb.mxu0 %v1418_v11 }
  0x16   :  { %225 = vmatmul.f32.vlgmr.msra.gmra.mxu3 %v1360_v19  ;;  %203 = vmatpush.msra.mxu2 %v1441_v17 }
  0x17   :  { %320 = vmatpush.msrb.mxu3 %v1391_v0  ;;  %634 = vmatpush.msrb.mxu1 %v1420_v12 }
  0x18   :  { %204 = vmatpush.msra.mxu2 %v1447_v18  ;;  %613 = vmatpush.msrb.mxu0 %v1425_v13 }
  0x19   :  { %205 = vmatmul.f32.vlgmr.msra.gmra.mxu2 %v1360_v19  ;;  %321 = vmatpush.msrb.mxu3 %v1393_v1 }
  0x1a   :  { %300 = vmatpush.msrb.mxu2 %v1402_v5  ;;  %635 = vmatpush.msrb.mxu1 %v1428_v14 }
  0x1b   :  { %322 = vmatpush.msrb.mxu3 %v1396_v2  ;;  %614 = vmatpush.msrb.mxu0 %v1433_v15 }
  0x1c   :  { %301 = vmatpush.msrb.mxu2 %v1404_v6  ;;  %636 = vmatpush.msrb.mxu1 %v1436_v16 }
  0x1d   :  { %323 = vmatpush.msrb.mxu3 %v1406_v7  ;;  %615 = vmatpush.msrb.mxu0 %v1441_v17 }
  0x1e   :  { %302 = vmatpush.msrb.mxu2 %v1413_v9  ;;  %835 = vmatpush.msra.mxu1 %v1391_v0 }
  0x1f   :  { %324 = vmatpush.msrb.mxu3 %v1411_v8  ;;  %616 = vmatpush.msrb.mxu0 %v1447_v18 }
  0x20   :  { %303 = vmatpush.msrb.mxu2 %v1418_v11  ;;  %836 = vmatpush.msra.mxu1 %v1393_v1 }
  0x21   :  { %325 = vmatpush.msrb.mxu3 %v1420_v12  ;;  %815 = vmatpush.msra.mxu0 %v1402_v5 }
  0x22   :  { %304 = vmatpush.msrb.mxu2 %v1425_v13  ;;  %837 = vmatpush.msra.mxu1 %v1396_v2 }
  0x23   :  { %326 = vmatpush.msrb.mxu3 %v1428_v14  ;;  %816 = vmatpush.msra.mxu0 %v1404_v6 }
  0x24   :  { %305 = vmatpush.msrb.mxu2 %v1433_v15  ;;  %838 = vmatpush.msra.mxu1 %v1406_v7 }
  0x25   :  { %327 = vmatpush.msrb.mxu3 %v1436_v16  ;;  %817 = vmatpush.msra.mxu0 %v1413_v9 }
  0x26   :  { %306 = vmatpush.msrb.mxu2 %v1441_v17  ;;  %839 = vmatpush.msra.mxu1 %v1411_v8 }
  0x27   :  { %423 = vmatpush.msra.mxu3 %v1391_v0  ;;  %818 = vmatpush.msra.mxu0 %v1418_v11 }
  0x28   :  { %307 = vmatpush.msrb.mxu2 %v1447_v18  ;;  %840 = vmatpush.msra.mxu1 %v1420_v12 }
  0x29   :  { %424 = vmatpush.msra.mxu3 %v1393_v1  ;;  %819 = vmatpush.msra.mxu0 %v1425_v13 }
  0x2a   :  { %403 = vmatpush.msra.mxu2 %v1402_v5  ;;  %841 = vmatpush.msra.mxu1 %v1428_v14 }
  0x2b   :  { %425 = vmatpush.msra.mxu3 %v1396_v2  ;;  %820 = vmatpush.msra.mxu0 %v1433_v15 }
  0x2c   :  { %404 = vmatpush.msra.mxu2 %v1404_v6  ;;  %842 = vmatpush.msra.mxu1 %v1436_v16 }
  0x2d   :  { %426 = vmatpush.msra.mxu3 %v1406_v7  ;;  %821 = vmatpush.msra.mxu0 %v1441_v17 }
  0x2e   :  { %405 = vmatpush.msra.mxu2 %v1413_v9  ;;  %1151 = vmatmul.msk.f32.gmra.mxu0 %vm60_vm0, %v51_v49 }
  0x2f   :  { %427 = vmatpush.msra.mxu3 %v1411_v8  ;;  %822 = vmatpush.msra.mxu0 %v1447_v18 }
  0x30   :  { %406 = vmatpush.msra.mxu2 %v1418_v11  ;;  %1159 = vmatmul.msk.f32.gmra.mxu1 %vm60_vm0, %v51_v49 }
  0x31   :  { %428 = vmatpush.msra.mxu3 %v1420_v12 }
  0x32   :  { %407 = vmatpush.msra.mxu2 %v1425_v13 }
  0x33   :  { %429 = vmatpush.msra.mxu3 %v1428_v14 }
  0x34   :  { %408 = vmatpush.msra.mxu2 %v1433_v15 }
  0x35   :  { %430 = vmatpush.msra.mxu3 %v1436_v16 }
  0x36   :  { %409 = vmatpush.msra.mxu2 %v1441_v17 }
  0x38   :  { %410 = vmatpush.msra.mxu2 %v1447_v18 }
  0x87   :  { %v143_v20 = vpop.f32.mrf.mxu1 }
  0x8a   :  { %v102_v24 = vpop.f32.mrf.mxu0 }
  0x99   :  { %v226_v21 = vpop.f32.mrf.mxu3 }
  0x9a   :  { %v230_v22 = vadd.f32 %v226_v21, %v143_v20 }
  0x9c   :  { %1209 = vtanh.f32 %v230_v22  ;;  %v206_v25 = vpop.f32.mrf.mxu2  ;;  %v1167_v46 = vmul.f32 -1.442695, %v230_v22 }
  0x9d   :  { %v229_v26 = vadd.f32 %v206_v25, %v102_v24 }
  0x9f   :  { %v1166_v27 = vmul.f32 -1.442695, %v229_v26 }
  0xa1   :  { %1211 = vpow2.f32 %v1166_v27 }
  0xa2   :  { %v1210_v23 = vpop.eup %1209 }
  0xa3   :  { %272 = vrot.lane.b32.xlu0 %v1210_v23, %s1361_s23 }
  0xa7   :  { %v1212_v28 = vpop.eup %1211 }
  0xa8   :  { %v237_v29 = vadd.f32 1.0, %v1212_v28 }
  0xaa   :  { %1213 = vrcp.f32 %v237_v29  ;;  %vm244_vm1 = vweird.f32 %v237_v29  ;;  %v250_v34 = vand.u32 2147483648, %v237_v29  ;;  %v248_v36 = vand.u32 2147483647, %v237_v29 }
  0xab   :  { %v105_v10 = vpop.f32.mrf.mxu0 }
  0xac   :  { %v251_v37 = vor.u32 1.1754944e-38, %v250_v34  ;;  %vm249_vm4 = vcmp.eq.f32.partialorder %v248_v36, 8.507059e+37 }
  0xad   :  { %v146_v62 = vpop.f32.mrf.mxu1 }
  0xb0   :  { %v1214_v30 = vpop.eup %1213 }
  0xb1   :  { %v240_v31 = vmul.f32 %v1214_v30, %v237_v29  ;;  %vm245_vm2 = vweird.f32 %v1214_v30 }
  0xb2   :  { %vm246_vm3 = vmor %vm244_vm1, %vm245_vm2 }
  0xb3   :  { %v241_v32 = vsub.f32 1.0, %v240_v31 }
  0xb5   :  { %v242_v33 = vmul.f32 %v1214_v30, %v241_v32 }
  0xb7   :  { %v243_v35 = vadd.f32 %v1214_v30, %v242_v33 }
  0xb9   :  { %v247_v38 = vsel %vm246_vm3, %v1214_v30, %v243_v35 }
  0xba   :  { %v252_v40 = vsel %vm249_vm4, %v251_v37, %v247_v38 }
  0xbb   :  { %v270_v42 = vmul.f32 0.0, %v252_v40 }
 0x115   :  { %v273_v39 = vpop.permute.xlu0 %272 }
 0x116   :  { %v275_v41 = vmul.f32 %v273_v39, %v252_v40 }
 0x118   :  { %277 = vrot.lane.b32.xlu0 %v275_v41, %s1361_s23 }
 0x18a   :  { %v278_v43 = vpop.permute.xlu0 %277 }
 0x18b   :  { %v1510_v44 = vadd.f32 %v278_v43, %v270_v42  ;;  %v52_v43 = vld [vmem:[%s1686_s0 + $0x10] sm:$0xff] }
 0x18c   :  { %1152 = vmatmul.msk.f32.gmra.mxu0 %vm60_vm0, %v52_v43  ;;  %1160 = vmatmul.msk.f32.gmra.mxu1 %vm60_vm0, %v52_v43 }
 0x18d   :  { %1215 = vtanh.f32 %v1510_v44 }
 0x18e   :  { %1217 = vpow2.f32 %v1167_v46 }
 0x193   :  { %v1216_v45 = vpop.eup %1215 }
 0x194   :  { %283 = vrot.lane.b32.xlu1 %v1216_v45, %s1361_s23  ;;  %v1218_v47 = vpop.eup %1217 }
 0x195   :  { %v238_v48 = vadd.f32 1.0, %v1218_v47 }
 0x197   :  { %1219 = vrcp.f32 %v238_v48  ;;  %v265_v55 = vand.u32 2147483648, %v238_v48  ;;  %vm259_vm6 = vweird.f32 %v238_v48  ;;  %v263_v56 = vand.u32 2147483647, %v238_v48 }
 0x199   :  { %v266_v58 = vor.u32 1.1754944e-38, %v265_v55  ;;  %vm264_vm8 = vcmp.eq.f32.partialorder %v263_v56, 8.507059e+37 }
 0x19d   :  { %v1220_v50 = vpop.eup %1219 }
 0x19e   :  { %v255_v51 = vmul.f32 %v1220_v50, %v238_v48  ;;  %vm260_vm5 = vweird.f32 %v1220_v50 }
 0x19f   :  { %vm261_vm7 = vmor %vm259_vm6, %vm260_vm5 }
 0x1a0   :  { %v256_v52 = vsub.f32 1.0, %v255_v51 }
 0x1a2   :  { %v257_v53 = vmul.f32 %v1220_v50, %v256_v52 }
 0x1a4   :  { %v258_v54 = vadd.f32 %v1220_v50, %v257_v53 }
 0x1a6   :  { %v262_v57 = vsel %vm261_vm7, %v1220_v50, %v258_v54 }
 0x1a7   :  { %v267_v59 = vsel %vm264_vm8, %v266_v58, %v262_v57 }
 0x206   :  { %v284_v60 = vpop.permute.xlu1 %283 }
 0x207   :  { %v286_v61 = vmul.f32 %v284_v60, %v267_v59 }
 0x209   :  { %1168 = vmatmul.msk.f32.vlgmr.msrb.gmra.mxu2 %vm185_vm9, %v286_v61  ;;  %1169 = vmatmul.msk.f32.vlgmr.msrb.gmra.mxu3 %vm185_vm9, %v286_v61  ;;  %v149_v56 = vpop.f32.mrf.mxu1  ;;  %v108_v60 = vpop.f32.mrf.mxu0 }
 0x20a   :  { %506 = vmatpush.msrb.mxu2 %v1402_v5  ;;  %526 = vmatpush.msrb.mxu3 %v1391_v0 }
 0x20c   :  { %507 = vmatpush.msrb.mxu2 %v1404_v6  ;;  %527 = vmatpush.msrb.mxu3 %v1393_v1 }
 0x20e   :  { %508 = vmatpush.msrb.mxu2 %v1413_v9  ;;  %528 = vmatpush.msrb.mxu3 %v1396_v2 }
 0x210   :  { %509 = vmatpush.msrb.mxu2 %v1418_v11  ;;  %529 = vmatpush.msrb.mxu3 %v1406_v7 }
 0x212   :  { %510 = vmatpush.msrb.mxu2 %v1425_v13  ;;  %530 = vmatpush.msrb.mxu3 %v1411_v8 }
 0x214   :  { %511 = vmatpush.msrb.mxu2 %v1433_v15  ;;  %531 = vmatpush.msrb.mxu3 %v1420_v12 }
 0x216   :  { %512 = vmatpush.msrb.mxu2 %v1441_v17  ;;  %532 = vmatpush.msrb.mxu3 %v1428_v14 }
 0x218   :  { %513 = vmatpush.msrb.mxu2 %v1447_v18  ;;  %533 = vmatpush.msrb.mxu3 %v1436_v16 }
 0x28c   :  { %v329_v63 = vpop.f32.mrf.mxu3  ;;  %v309_v19 = vpop.f32.mrf.mxu2 }
 0x28d   :  { %v333_v3 = vadd.f32 %v329_v63, %v146_v62  ;;  %v332_v20 = vadd.f32 %v309_v19, %v105_v10 }
 0x28f   :  { %1221 = vtanh.f32 %v333_v3  ;;  %v1170_v21 = vmul.f32 -1.442695, %v332_v20  ;;  %v1171_v40 = vmul.f32 -1.442695, %v333_v3 }
 0x291   :  { %1223 = vpow2.f32 %v1170_v21 }
 0x295   :  { %v1222_v4 = vpop.eup %1221 }
 0x296   :  { %375 = vrot.lane.b32.xlu1 %v1222_v4, %s1361_s23 }
 0x297   :  { %v1224_v22 = vpop.eup %1223 }
 0x298   :  { %v340_v23 = vadd.f32 1.0, %v1224_v22 }
 0x29a   :  { %1225 = vrcp.f32 %v340_v23  ;;  %v353_v29 = vand.u32 2147483648, %v340_v23  ;;  %vm347_vm11 = vweird.f32 %v340_v23  ;;  %v351_v30 = vand.u32 2147483647, %v340_v23 }
 0x29c   :  { %v354_v32 = vor.u32 1.1754944e-38, %v353_v29  ;;  %vm352_vm13 = vcmp.eq.f32.partialorder %v351_v30, 8.507059e+37 }
 0x2a0   :  { %v1226_v24 = vpop.eup %1225 }
 0x2a1   :  { %v343_v25 = vmul.f32 %v1226_v24, %v340_v23  ;;  %vm348_vm10 = vweird.f32 %v1226_v24 }
 0x2a2   :  { %vm349_vm12 = vmor %vm347_vm11, %vm348_vm10 }
 0x2a3   :  { %v344_v26 = vsub.f32 1.0, %v343_v25 }
 0x2a5   :  { %v345_v27 = vmul.f32 %v1226_v24, %v344_v26 }
 0x2a7   :  { %v346_v28 = vadd.f32 %v1226_v24, %v345_v27 }
 0x2a9   :  { %v350_v31 = vsel %vm349_vm12, %v1226_v24, %v346_v28 }
 0x2aa   :  { %v355_v34 = vsel %vm352_vm13, %v354_v32, %v350_v31 }
 0x2ab   :  { %v373_v36 = vmul.f32 %v355_v34, %v1510_v44 }
 0x308   :  { %v376_v33 = vpop.permute.xlu1 %375 }
 0x309   :  { %v378_v35 = vmul.f32 %v376_v33, %v355_v34 }
 0x30b   :  { %380 = vrot.lane.b32.xlu2 %v378_v35, %s1361_s23 }
 0x365   :  { %v381_v37 = vpop.permute.xlu2 %380 }
 0x366   :  { %v1540_v38 = vadd.f32 %v381_v37, %v373_v36  ;;  %v53_v37 = vld [vmem:[%s1686_s0 + $0x18] sm:$0xff] }
 0x367   :  { %1153 = vmatmul.msk.f32.gmra.mxu0 %vm60_vm0, %v53_v37  ;;  %1161 = vmatmul.msk.f32.gmra.mxu1 %vm60_vm0, %v53_v37 }
 0x368   :  { %1227 = vtanh.f32 %v1540_v38 }
 0x369   :  { %1229 = vpow2.f32 %v1171_v40 }
 0x36e   :  { %v1228_v39 = vpop.eup %1227 }
 0x36f   :  { %386 = vrot.lane.b32.xlu2 %v1228_v39, %s1361_s23  ;;  %v1230_v41 = vpop.eup %1229 }
 0x370   :  { %v341_v42 = vadd.f32 1.0, %v1230_v41 }
 0x372   :  { %1231 = vrcp.f32 %v341_v42  ;;  %v368_v49 = vand.u32 2147483648, %v341_v42  ;;  %vm362_vm15 = vweird.f32 %v341_v42  ;;  %v366_v50 = vand.u32 2147483647, %v341_v42 }
 0x374   :  { %v369_v52 = vor.u32 1.1754944e-38, %v368_v49  ;;  %vm367_vm2 = vcmp.eq.f32.partialorder %v366_v50, 8.507059e+37 }
 0x378   :  { %v1232_v44 = vpop.eup %1231 }
 0x379   :  { %v358_v45 = vmul.f32 %v1232_v44, %v341_v42  ;;  %vm363_vm14 = vweird.f32 %v1232_v44 }
 0x37a   :  { %vm364_vm1 = vmor %vm362_vm15, %vm363_vm14 }
 0x37b   :  { %v359_v46 = vsub.f32 1.0, %v358_v45 }
 0x37d   :  { %v360_v47 = vmul.f32 %v1232_v44, %v359_v46 }
 0x37f   :  { %v361_v48 = vadd.f32 %v1232_v44, %v360_v47 }
 0x381   :  { %v365_v51 = vsel %vm364_vm1, %v1232_v44, %v361_v48 }
 0x382   :  { %v370_v53 = vsel %vm367_vm2, %v369_v52, %v365_v51 }
 0x3c9   :  { %v387_v54 = vpop.permute.xlu2 %386 }
 0x3ca   :  { %v389_v55 = vmul.f32 %v387_v54, %v370_v53 }
 0x3cc   :  { %1172 = vmatmul.msk.f32.vlgmr.msra.gmra.mxu2 %vm185_vm9, %v389_v55  ;;  %1173 = vmatmul.msk.f32.vlgmr.msra.gmra.mxu3 %vm185_vm9, %v389_v55 }
 0x3cd   :  { %712 = vmatpush.msra.mxu2 %v1402_v5  ;;  %732 = vmatpush.msra.mxu3 %v1391_v0 }
 0x3cf   :  { %713 = vmatpush.msra.mxu2 %v1404_v6  ;;  %733 = vmatpush.msra.mxu3 %v1393_v1 }
 0x3d1   :  { %714 = vmatpush.msra.mxu2 %v1413_v9  ;;  %734 = vmatpush.msra.mxu3 %v1396_v2 }
 0x3d3   :  { %715 = vmatpush.msra.mxu2 %v1418_v11  ;;  %735 = vmatpush.msra.mxu3 %v1406_v7 }
 0x3d5   :  { %716 = vmatpush.msra.mxu2 %v1425_v13  ;;  %736 = vmatpush.msra.mxu3 %v1411_v8 }
 0x3d7   :  { %717 = vmatpush.msra.mxu2 %v1433_v15  ;;  %737 = vmatpush.msra.mxu3 %v1420_v12 }
 0x3d9   :  { %718 = vmatpush.msra.mxu2 %v1441_v17  ;;  %738 = vmatpush.msra.mxu3 %v1428_v14 }
 0x3db   :  { %719 = vmatpush.msra.mxu2 %v1447_v18  ;;  %739 = vmatpush.msra.mxu3 %v1436_v16 }
 0x44f   :  { %v432_v57 = vpop.f32.mrf.mxu3  ;;  %v412_v61 = vpop.f32.mrf.mxu2 }
 0x450   :  { %v436_v58 = vadd.f32 %v432_v57, %v149_v56  ;;  %v435_v62 = vadd.f32 %v412_v61, %v108_v60  ;;  %v54_v56 = vld [vmem:[%s1686_s0 + $0x20] sm:$0xff]  ;;  %v55_v57 = vld [vmem:[%s1686_s0 + $0x28] sm:$0xff]  ;;  %v57_v61 = vld [vmem:[%s1686_s0 + $0x38] sm:$0xff] }
 0x451   :  { %1154 = vmatmul.msk.f32.gmra.mxu0 %vm60_vm0, %v54_v56  ;;  %1162 = vmatmul.msk.f32.gmra.mxu1 %vm60_vm0, %v54_v56 }
 0x452   :  { %1233 = vtanh.f32 %v436_v58  ;;  %v1174_v63 = vmul.f32 -1.442695, %v435_v62  ;;  %v1175_v34 = vmul.f32 -1.442695, %v436_v58  ;;  %v56_v58 = vld [vmem:[%s1686_s0 + $0x30] sm:$0xff] }
 0x454   :  { %1235 = vpow2.f32 %v1174_v63 }
 0x458   :  { %v1234_v59 = vpop.eup %1233 }
 0x459   :  { %478 = vrot.lane.b32.xlu0 %v1234_v59, %s1361_s23  ;;  %1155 = vmatmul.msk.f32.gmra.mxu0 %vm60_vm0, %v55_v57 }
 0x45a   :  { %v1236_v3 = vpop.eup %1235  ;;  %1163 = vmatmul.msk.f32.gmra.mxu1 %vm60_vm0, %v55_v57 }
 0x45b   :  { %v443_v4 = vadd.f32 1.0, %v1236_v3 }
 0x45d   :  { %1237 = vrcp.f32 %v443_v4  ;;  %v456_v23 = vand.u32 2147483648, %v443_v4  ;;  %vm450_vm4 = vweird.f32 %v443_v4  ;;  %v454_v24 = vand.u32 2147483647, %v443_v4 }
 0x45f   :  { %v457_v26 = vor.u32 1.1754944e-38, %v456_v23  ;;  %vm455_vm6 = vcmp.eq.f32.partialorder %v454_v24, 8.507059e+37 }
 0x461   :  { %1156 = vmatmul.msk.f32.gmra.mxu0 %vm60_vm0, %v56_v58 }
 0x462   :  { %1164 = vmatmul.msk.f32.gmra.mxu1 %vm60_vm0, %v56_v58 }
 0x463   :  { %v1238_v10 = vpop.eup %1237 }
 0x464   :  { %v446_v19 = vmul.f32 %v1238_v10, %v443_v4  ;;  %vm451_vm3 = vweird.f32 %v1238_v10 }
 0x465   :  { %vm452_vm5 = vmor %vm450_vm4, %vm451_vm3 }
 0x466   :  { %v447_v20 = vsub.f32 1.0, %v446_v19 }
 0x468   :  { %v448_v21 = vmul.f32 %v1238_v10, %v447_v20 }
 0x469   :  { %1157 = vmatmul.msk.f32.gmra.mxu0 %vm60_vm0, %v57_v61 }
 0x46a   :  { %v449_v22 = vadd.f32 %v1238_v10, %v448_v21  ;;  %1165 = vmatmul.msk.f32.gmra.mxu1 %vm60_vm0, %v57_v61 }
 0x46c   :  { %v453_v25 = vsel %vm452_vm5, %v1238_v10, %v449_v22 }
 0x46d   :  { %v458_v28 = vsel %vm455_vm6, %v457_v26, %v453_v25 }
 0x46e   :  { %v476_v30 = vmul.f32 %v458_v28, %v1540_v38 }
 0x4cb   :  { %v479_v27 = vpop.permute.xlu0 %478 }
 0x4cc   :  { %v481_v29 = vmul.f32 %v479_v27, %v458_v28 }
 0x4ce   :  { %483 = vrot.lane.b32.xlu1 %v481_v29, %s1361_s23 }
 0x540   :  { %v484_v31 = vpop.permute.xlu1 %483 }
 0x541   :  { %v1570_v32 = vadd.f32 %v484_v31, %v476_v30 }
 0x543   :  { %1239 = vtanh.f32 %v1570_v32 }
 0x544   :  { %1241 = vpow2.f32 %v1175_v34 }
 0x549   :  { %v1240_v33 = vpop.eup %1239 }
 0x54a   :  { %489 = vrot.lane.b32.xlu2 %v1240_v33, %s1361_s23  ;;  %v1242_v35 = vpop.eup %1241 }
 0x54b   :  { %v444_v36 = vadd.f32 1.0, %v1242_v35 }
 0x54d   :  { %1243 = vrcp.f32 %v444_v36  ;;  %v471_v43 = vand.u32 2147483648, %v444_v36  ;;  %vm465_vm8 = vweird.f32 %v444_v36  ;;  %v469_v44 = vand.u32 2147483647, %v444_v36 }
 0x54f   :  { %v472_v46 = vor.u32 1.1754944e-38, %v471_v43  ;;  %vm470_vm11 = vcmp.eq.f32.partialorder %v469_v44, 8.507059e+37 }
 0x553   :  { %v1244_v38 = vpop.eup %1243 }
 0x554   :  { %v461_v39 = vmul.f32 %v1244_v38, %v444_v36  ;;  %vm466_vm7 = vweird.f32 %v1244_v38 }
 0x555   :  { %vm467_vm10 = vmor %vm465_vm8, %vm466_vm7 }
 0x556   :  { %v462_v40 = vsub.f32 1.0, %v461_v39 }
 0x558   :  { %v463_v41 = vmul.f32 %v1244_v38, %v462_v40 }
 0x55a   :  { %v464_v42 = vadd.f32 %v1244_v38, %v463_v41 }
 0x55c   :  { %v468_v45 = vsel %vm467_vm10, %v1244_v38, %v464_v42 }
 0x55d   :  { %v473_v47 = vsel %vm470_vm11, %v472_v46, %v468_v45 }
 0x5a4   :  { %v490_v48 = vpop.permute.xlu2 %489 }
 0x5a5   :  { %v492_v49 = vmul.f32 %v490_v48, %v473_v47 }
 0x5a7   :  { %1176 = vmatmul.msk.f32.vlgmr.msrb.gmra.mxu2 %vm185_vm9, %v492_v49  ;;  %1177 = vmatmul.msk.f32.vlgmr.msrb.gmra.mxu3 %vm185_vm9, %v492_v49 }
 0x5a8   :  { %918 = vmatpush.msrb.mxu2 %v1402_v5  ;;  %938 = vmatpush.msrb.mxu3 %v1391_v0  ;;  %v152_v0 = vpop.f32.mrf.mxu1 }
 0x5aa   :  { %919 = vmatpush.msrb.mxu2 %v1404_v6  ;;  %939 = vmatpush.msrb.mxu3 %v1393_v1  ;;  %v111_v6 = vpop.f32.mrf.mxu0 }
 0x5ac   :  { %920 = vmatpush.msrb.mxu2 %v1413_v9  ;;  %940 = vmatpush.msrb.mxu3 %v1396_v2 }
 0x5ae   :  { %921 = vmatpush.msrb.mxu2 %v1418_v11  ;;  %941 = vmatpush.msrb.mxu3 %v1406_v7 }
 0x5b0   :  { %922 = vmatpush.msrb.mxu2 %v1425_v13  ;;  %942 = vmatpush.msrb.mxu3 %v1411_v8  ;;  %v155_v31 = vpop.f32.mrf.mxu1 }
 0x5b2   :  { %923 = vmatpush.msrb.mxu2 %v1433_v15  ;;  %943 = vmatpush.msrb.mxu3 %v1420_v12  ;;  %v114_v38 = vpop.f32.mrf.mxu0 }
 0x5b4   :  { %924 = vmatpush.msrb.mxu2 %v1441_v17  ;;  %944 = vmatpush.msrb.mxu3 %v1428_v14 }
 0x5b6   :  { %925 = vmatpush.msrb.mxu2 %v1447_v18  ;;  %945 = vmatpush.msrb.mxu3 %v1436_v16 }
 0x5ba   :  { %v117_v39 = vpop.f32.mrf.mxu0 }
 0x5c2   :  { %v1633_v40 = vpop.f32.mrf.mxu0 }
 0x5ca   :  { %v1635_v41 = vpop.f32.mrf.mxu0 }
 0x62a   :  { %v535_v1 = vpop.f32.mrf.mxu3  ;;  %v515_v7 = vpop.f32.mrf.mxu2 }
 0x62b   :  { %v539_v2 = vadd.f32 %v535_v1, %v152_v0  ;;  %v538_v8 = vadd.f32 %v515_v7, %v111_v6 }
 0x62d   :  { %1245 = vtanh.f32 %v539_v2  ;;  %v1178_v9 = vmul.f32 -1.442695, %v538_v8  ;;  %v1179_v3 = vmul.f32 -1.442695, %v539_v2 }
 0x62f   :  { %1247 = vpow2.f32 %v1178_v9 }
 0x633   :  { %v1246_v5 = vpop.eup %1245 }
 0x634   :  { %581 = vrot.lane.b32.xlu0 %v1246_v5, %s1361_s23 }
 0x635   :  { %v1248_v11 = vpop.eup %1247 }
 0x636   :  { %v546_v12 = vadd.f32 1.0, %v1248_v11 }
 0x638   :  { %1249 = vrcp.f32 %v546_v12  ;;  %v559_v18 = vand.u32 2147483648, %v546_v12  ;;  %vm553_vm13 = vweird.f32 %v546_v12  ;;  %v557_v50 = vand.u32 2147483647, %v546_v12 }
 0x63a   :  { %v560_v52 = vor.u32 1.1754944e-38, %v559_v18  ;;  %vm558_vm15 = vcmp.eq.f32.partialorder %v557_v50, 8.507059e+37 }
 0x63e   :  { %v1250_v13 = vpop.eup %1249 }
 0x63f   :  { %v549_v14 = vmul.f32 %v1250_v13, %v546_v12  ;;  %vm554_vm12 = vweird.f32 %v1250_v13 }
 0x640   :  { %vm555_vm14 = vmor %vm553_vm13, %vm554_vm12 }
 0x641   :  { %v550_v15 = vsub.f32 1.0, %v549_v14 }
 0x643   :  { %v551_v17 = vmul.f32 %v1250_v13, %v550_v15 }
 0x645   :  { %v552_v16 = vadd.f32 %v1250_v13, %v551_v17 }
 0x647   :  { %v556_v51 = vsel %vm555_vm14, %v1250_v13, %v552_v16 }
 0x648   :  { %v561_v54 = vsel %vm558_vm15, %v560_v52, %v556_v51 }
 0x649   :  { %v579_v59 = vmul.f32 %v561_v54, %v1570_v32  ;;  %v1626_v32 = vpop.f32.mrf.mxu1 }
 0x651   :  { %v1628_v33 = vpop.f32.mrf.mxu1 }
 0x659   :  { %v1630_v34 = vpop.f32.mrf.mxu1 }
 0x6a6   :  { %v582_v53 = vpop.permute.xlu0 %581 }
 0x6a7   :  { %v584_v55 = vmul.f32 %v582_v53, %v561_v54 }
 0x6a9   :  { %586 = vrot.lane.b32.xlu1 %v584_v55, %s1361_s23 }
 0x71b   :  { %v587_v60 = vpop.permute.xlu1 %586 }
 0x71c   :  { %v1618_v62 = vadd.f32 %v587_v60, %v579_v59 }
 0x71e   :  { %1251 = vtanh.f32 %v1618_v62 }
 0x71f   :  { %1253 = vpow2.f32 %v1179_v3 }
 0x724   :  { %v1252_v63 = vpop.eup %1251 }
 0x725   :  { %592 = vrot.lane.b32.xlu2 %v1252_v63, %s1361_s23  ;;  %v1254_v4 = vpop.eup %1253 }
 0x726   :  { %v547_v10 = vadd.f32 1.0, %v1254_v4 }
 0x728   :  { %1255 = vrcp.f32 %v547_v10  ;;  %v574_v24 = vand.u32 2147483648, %v547_v10  ;;  %vm568_vm2 = vweird.f32 %v547_v10  ;;  %v572_v25 = vand.u32 2147483647, %v547_v10 }
 0x72a   :  { %v575_v27 = vor.u32 1.1754944e-38, %v574_v24  ;;  %vm573_vm4 = vcmp.eq.f32.partialorder %v572_v25, 8.507059e+37 }
 0x72e   :  { %v1256_v19 = vpop.eup %1255 }
 0x72f   :  { %v564_v20 = vmul.f32 %v1256_v19, %v547_v10  ;;  %vm569_vm1 = vweird.f32 %v1256_v19 }
 0x730   :  { %vm570_vm3 = vmor %vm568_vm2, %vm569_vm1 }
 0x731   :  { %v565_v21 = vsub.f32 1.0, %v564_v20 }
 0x733   :  { %v566_v22 = vmul.f32 %v1256_v19, %v565_v21 }
 0x735   :  { %v567_v23 = vadd.f32 %v1256_v19, %v566_v22 }
 0x737   :  { %v571_v26 = vsel %vm570_vm3, %v1256_v19, %v567_v23 }
 0x738   :  { %v576_v28 = vsel %vm573_vm4, %v575_v27, %v571_v26 }
 0x77f   :  { %v593_v29 = vpop.permute.xlu2 %592 }
 0x780   :  { %v595_v30 = vmul.f32 %v593_v29, %v576_v28 }
 0x782   :  { %1180 = vmatmul.msk.f32.vlgmr.msrb.gmra.mxu0 %vm185_vm9, %v595_v30  ;;  %1181 = vmatmul.msk.f32.vlgmr.msrb.gmra.mxu1 %vm185_vm9, %v595_v30 }
 0x7ff   :  { %v638_v35 = vpop.f32.mrf.mxu1  ;;  %v618_v42 = vpop.f32.mrf.mxu0 }
 0x800   :  { %v642_v36 = vadd.f32 %v638_v35, %v155_v31  ;;  %v641_v43 = vadd.f32 %v618_v42, %v114_v38 }
 0x802   :  { %1257 = vtanh.f32 %v642_v36  ;;  %v1182_v44 = vmul.f32 -1.442695, %v641_v43  ;;  %v1183_v17 = vmul.f32 -1.442695, %v642_v36 }
 0x804   :  { %1259 = vpow2.f32 %v1182_v44 }
 0x808   :  { %v1258_v37 = vpop.eup %1257 }
 0x809   :  { %684 = vrot.lane.b32.xlu0 %v1258_v37, %s1361_s23 }
 0x80a   :  { %v1260_v45 = vpop.eup %1259 }
 0x80b   :  { %v649_v46 = vadd.f32 1.0, %v1260_v45 }
 0x80d   :  { %1261 = vrcp.f32 %v649_v46  ;;  %v662_v2 = vand.u32 2147483648, %v649_v46  ;;  %vm656_vm6 = vweird.f32 %v649_v46  ;;  %v660_v5 = vand.u32 2147483647, %v649_v46 }
 0x80f   :  { %v663_v7 = vor.u32 1.1754944e-38, %v662_v2  ;;  %vm661_vm8 = vcmp.eq.f32.partialorder %v660_v5, 8.507059e+37 }
 0x813   :  { %v1262_v47 = vpop.eup %1261 }
 0x814   :  { %v652_v48 = vmul.f32 %v1262_v47, %v649_v46  ;;  %vm657_vm5 = vweird.f32 %v1262_v47 }
 0x815   :  { %vm658_vm7 = vmor %vm656_vm6, %vm657_vm5 }
 0x816   :  { %v653_v49 = vsub.f32 1.0, %v652_v48 }
 0x818   :  { %v654_v0 = vmul.f32 %v1262_v47, %v653_v49 }
 0x81a   :  { %v655_v1 = vadd.f32 %v1262_v47, %v654_v0 }
 0x81c   :  { %v659_v6 = vsel %vm658_vm7, %v1262_v47, %v655_v1 }
 0x81d   :  { %v664_v9 = vsel %vm661_vm8, %v663_v7, %v659_v6 }
 0x81e   :  { %v682_v12 = vmul.f32 %v664_v9, %v1618_v62 }
 0x87b   :  { %v685_v8 = vpop.permute.xlu0 %684 }
 0x87c   :  { %v687_v11 = vmul.f32 %v685_v8, %v664_v9 }
 0x87e   :  { %689 = vrot.lane.b32.xlu1 %v687_v11, %s1361_s23 }
 0x8f0   :  { %v690_v13 = vpop.permute.xlu1 %689 }
 0x8f1   :  { %v692_v14 = vadd.f32 %v690_v13, %v682_v12 }
 0x8f3   :  { %1263 = vtanh.f32 %v692_v14 }
 0x8f4   :  { %1265 = vpow2.f32 %v1183_v17 }
 0x8f9   :  { %v1264_v15 = vpop.eup %1263 }
 0x8fa   :  { %695 = vrot.lane.b32.xlu2 %v1264_v15, %s1361_s23  ;;  %v1266_v16 = vpop.eup %1265 }
 0x8fb   :  { %v650_v18 = vadd.f32 1.0, %v1266_v16 }
 0x8fd   :  { %1267 = vrcp.f32 %v650_v18  ;;  %v677_v55 = vand.u32 2147483648, %v650_v18  ;;  %vm671_vm11 = vweird.f32 %v650_v18  ;;  %v675_v56 = vand.u32 2147483647, %v650_v18 }
 0x8ff   :  { %v678_v58 = vor.u32 1.1754944e-38, %v677_v55  ;;  %vm676_vm13 = vcmp.eq.f32.partialorder %v675_v56, 8.507059e+37 }
 0x903   :  { %v1268_v50 = vpop.eup %1267 }
 0x904   :  { %v667_v51 = vmul.f32 %v1268_v50, %v650_v18  ;;  %vm672_vm10 = vweird.f32 %v1268_v50 }
 0x905   :  { %vm673_vm12 = vmor %vm671_vm11, %vm672_vm10 }
 0x906   :  { %v668_v52 = vsub.f32 1.0, %v667_v51 }
 0x908   :  { %v669_v53 = vmul.f32 %v1268_v50, %v668_v52 }
 0x90a   :  { %v670_v54 = vadd.f32 %v1268_v50, %v669_v53 }
 0x90c   :  { %v674_v57 = vsel %vm673_vm12, %v1268_v50, %v670_v54 }
 0x90d   :  { %v679_v59 = vsel %vm676_vm13, %v678_v58, %v674_v57 }
 0x954   :  { %v696_v60 = vpop.permute.xlu2 %695 }
 0x955   :  { %v698_v61 = vmul.f32 %v696_v60, %v679_v59 }
 0x957   :  { %1184 = vmatmul.msk.f32.vlgmr.msra.gmra.mxu2 %vm185_vm9, %v698_v61  ;;  %1185 = vmatmul.msk.f32.vlgmr.msra.gmra.mxu3 %vm185_vm9, %v698_v61 }
 0x9da   :  { %v741_v62 = vpop.f32.mrf.mxu3  ;;  %v721_v4 = vpop.f32.mrf.mxu2 }
 0x9db   :  { %v745_v63 = vadd.f32 %v741_v62, %v1626_v32  ;;  %v744_v10 = vadd.f32 %v721_v4, %v117_v39 }
 0x9dd   :  { %1269 = vtanh.f32 %v745_v63  ;;  %v1186_v19 = vmul.f32 -1.442695, %v744_v10  ;;  %v1187_v42 = vmul.f32 -1.442695, %v745_v63 }
 0x9df   :  { %1271 = vpow2.f32 %v1186_v19 }
 0x9e3   :  { %v1270_v3 = vpop.eup %1269 }
 0x9e4   :  { %787 = vrot.lane.b32.xlu0 %v1270_v3, %s1361_s23 }
 0x9e5   :  { %v1272_v20 = vpop.eup %1271 }
 0x9e6   :  { %v752_v21 = vadd.f32 1.0, %v1272_v20 }
 0x9e8   :  { %1273 = vrcp.f32 %v752_v21  ;;  %v765_v27 = vand.u32 2147483648, %v752_v21  ;;  %vm759_vm15 = vweird.f32 %v752_v21  ;;  %v763_v28 = vand.u32 2147483647, %v752_v21 }
 0x9ea   :  { %v766_v30 = vor.u32 1.1754944e-38, %v765_v27  ;;  %vm764_vm2 = vcmp.eq.f32.partialorder %v763_v28, 8.507059e+37 }
 0x9ee   :  { %v1274_v22 = vpop.eup %1273 }
 0x9ef   :  { %v755_v23 = vmul.f32 %v1274_v22, %v752_v21  ;;  %vm760_vm14 = vweird.f32 %v1274_v22 }
 0x9f0   :  { %vm761_vm1 = vmor %vm759_vm15, %vm760_vm14 }
 0x9f1   :  { %v756_v24 = vsub.f32 1.0, %v755_v23 }
 0x9f3   :  { %v757_v25 = vmul.f32 %v1274_v22, %v756_v24 }
 0x9f5   :  { %v758_v26 = vadd.f32 %v1274_v22, %v757_v25 }
 0x9f7   :  { %v762_v29 = vsel %vm761_vm1, %v1274_v22, %v758_v26 }
 0x9f8   :  { %v767_v32 = vsel %vm764_vm2, %v766_v30, %v762_v29 }
 0x9f9   :  { %v785_v36 = vmul.f32 %v767_v32, %v692_v14 }
 0xa56   :  { %v788_v31 = vpop.permute.xlu0 %787 }
 0xa57   :  { %v790_v35 = vmul.f32 %v788_v31, %v767_v32 }
 0xa59   :  { %792 = vrot.lane.b32.xlu1 %v790_v35, %s1361_s23 }
 0xacb   :  { %v793_v37 = vpop.permute.xlu1 %792 }
 0xacc   :  { %v795_v38 = vadd.f32 %v793_v37, %v785_v36 }
 0xace   :  { %1275 = vtanh.f32 %v795_v38 }
 0xacf   :  { %1277 = vpow2.f32 %v1187_v42  ;;  %v1009_v42 = vld [vmem:[#allocation3 + $0x90] sm:$0xff] }
 0xad0   :  { %1030 = vmatpush.msra.mxu2 %v1009_v42 }
 0xad4   :  { %v1276_v39 = vpop.eup %1275 }
 0xad5   :  { %798 = vrot.lane.b32.xlu2 %v1276_v39, %s1361_s23  ;;  %v1278_v43 = vpop.eup %1277 }
 0xad6   :  { %v753_v44 = vadd.f32 1.0, %v1278_v43  ;;  %v1008_v43 = vld [vmem:[%s1687_s1] sm:$0xff] }
 0xad8   :  { %1279 = vrcp.f32 %v753_v44  ;;  %v780_v0 = vand.u32 2147483648, %v753_v44  ;;  %vm774_vm4 = vweird.f32 %v753_v44  ;;  %v778_v1 = vand.u32 2147483647, %v753_v44 }
 0xada   :  { %v781_v5 = vor.u32 1.1754944e-38, %v780_v0  ;;  %vm779_vm6 = vcmp.eq.f32.partialorder %v778_v1, 8.507059e+37 }
 0xade   :  { %v1280_v45 = vpop.eup %1279 }
 0xadf   :  { %v770_v46 = vmul.f32 %v1280_v45, %v753_v44  ;;  %vm775_vm3 = vweird.f32 %v1280_v45 }
 0xae0   :  { %vm776_vm5 = vmor %vm774_vm4, %vm775_vm3 }
 0xae1   :  { %v771_v47 = vsub.f32 1.0, %v770_v46 }
 0xae3   :  { %v772_v48 = vmul.f32 %v1280_v45, %v771_v47 }
 0xae5   :  { %v773_v49 = vadd.f32 %v1280_v45, %v772_v48 }
 0xae7   :  { %v777_v2 = vsel %vm776_vm5, %v1280_v45, %v773_v49 }
 0xae8   :  { %v782_v6 = vsel %vm779_vm6, %v781_v5, %v777_v2 }
 0xb2f   :  { %v799_v7 = vpop.permute.xlu2 %798 }
 0xb30   :  { %v801_v8 = vmul.f32 %v799_v7, %v782_v6  ;;  %v1043_v6 = vld [vmem:[#allocation3 + $0x110] sm:$0xff] }
 0xb31   :  { %v1047_v7 = vld [vmem:[#allocation3 + $0x150] sm:$0xff]  ;;  %1083 = vmatpush.msrb.mxu0 %v1043_v6 }
 0xb32   :  { %1188 = vmatmul.msk.f32.vlgmr.msra.gmra.mxu0 %vm185_vm9, %v801_v8  ;;  %1189 = vmatmul.msk.f32.vlgmr.msra.gmra.mxu1 %vm185_vm9, %v801_v8  ;;  %v1042_v8 = vld [vmem:[#allocation3 + $0x100] sm:$0xff] }
 0xb33   :  { %1064 = vmatpush.msra.mxu3 %v1047_v7  ;;  %1084 = vmatpush.msrb.mxu0 %v1042_v8 }
 0xbaf   :  { %v844_v9 = vpop.f32.mrf.mxu1  ;;  %v824_v13 = vpop.f32.mrf.mxu0 }
 0xbb0   :  { %v848_v11 = vadd.f32 %v844_v9, %v1628_v33  ;;  %v847_v14 = vadd.f32 %v824_v13, %v1633_v40  ;;  %v1046_v9 = vld [vmem:[#allocation3 + $0x140] sm:$0xff] }
 0xbb1   :  { %1065 = vmatpush.msra.mxu3 %v1046_v9  ;;  %v1040_v13 = vld [vmem:[#allocation3 + $0xe0] sm:$0xff] }
 0xbb2   :  { %1281 = vtanh.f32 %v848_v11  ;;  %v1190_v15 = vmul.f32 -1.442695, %v847_v14  ;;  %v1191_v63 = vmul.f32 -1.442695, %v848_v11  ;;  %v1041_v11 = vld [vmem:[#allocation3 + $0xf0] sm:$0xff]  ;;  %v1044_v14 = vld [vmem:[#allocation3 + $0x120] sm:$0xff] }
 0xbb3   :  { %1085 = vmatpush.msrb.mxu0 %v1041_v11 }
 0xbb4   :  { %1283 = vpow2.f32 %v1190_v15  ;;  %v1206_v15 = vld [vmem:[%s1689_s3] ss:$0 sm:$0xff] }
 0xbb5   :  { %1086 = vmatpush.msrb.mxu0 %v1040_v13 }
 0xbb8   :  { %v1282_v12 = vpop.eup %1281 }
 0xbb9   :  { %890 = vrot.lane.b32.xlu0 %v1282_v12, %s1361_s23  ;;  %v1045_v12 = vld [vmem:[#allocation3 + $0x130] sm:$0xff] }
 0xbba   :  { %v1284_v17 = vpop.eup %1283  ;;  %1066 = vmatpush.msra.mxu3 %v1045_v12 }
 0xbbb   :  { %v855_v16 = vadd.f32 1.0, %v1284_v17  ;;  %v1039_v17 = vld [vmem:[#allocation3 + $0xd0] sm:$0xff] }
 0xbbc   :  { %1067 = vmatpush.msra.mxu3 %v1044_v14  ;;  %1087 = vmatpush.msrb.mxu0 %v1039_v17 }
 0xbbd   :  { %1285 = vrcp.f32 %v855_v16  ;;  %v868_v54 = vand.u32 2147483648, %v855_v16  ;;  %vm862_vm8 = vweird.f32 %v855_v16  ;;  %v866_v33 = vand.u32 2147483647, %v855_v16 }
 0xbbf   :  { %v869_v56 = vor.u32 1.1754944e-38, %v868_v54  ;;  %vm867_vm11 = vcmp.eq.f32.partialorder %v866_v33, 8.507059e+37 }
 0xbc3   :  { %v1286_v18 = vpop.eup %1285 }
 0xbc4   :  { %v858_v50 = vmul.f32 %v1286_v18, %v855_v16  ;;  %vm863_vm7 = vweird.f32 %v1286_v18  ;;  %v1038_v16 = vld [vmem:[#allocation3 + $0xc0] sm:$0xff] }
 0xbc5   :  { %vm864_vm10 = vmor %vm862_vm8, %vm863_vm7  ;;  %1088 = vmatpush.msrb.mxu0 %v1038_v16 }
 0xbc6   :  { %v859_v51 = vsub.f32 1.0, %v858_v50 }
 0xbc8   :  { %v860_v52 = vmul.f32 %v1286_v18, %v859_v51  ;;  %v1037_v51 = vld [vmem:[#allocation3 + $0xb0] sm:$0xff] }
 0xbc9   :  { %1089 = vmatpush.msrb.mxu0 %v1037_v51 }
 0xbca   :  { %v861_v53 = vadd.f32 %v1286_v18, %v860_v52 }
 0xbcc   :  { %v865_v55 = vsel %vm864_vm10, %v1286_v18, %v861_v53 }
 0xbcd   :  { %v870_v40 = vsel %vm867_vm11, %v869_v56, %v865_v55 }
 0xbce   :  { %v888_v59 = vmul.f32 %v870_v40, %v795_v38 }
 0xc2b   :  { %v891_v57 = vpop.permute.xlu0 %890 }
 0xc2c   :  { %v893_v58 = vmul.f32 %v891_v57, %v870_v40 }
 0xc2e   :  { %895 = vrot.lane.b32.xlu1 %v893_v58, %s1361_s23  ;;  %v1036_v58 = vld [vmem:[#allocation3 + $0xa0] sm:$0xff] }
 0xc2f   :  { %1090 = vmatpush.msrb.mxu0 %v1036_v58 }
 0xca0   :  { %v896_v60 = vpop.permute.xlu1 %895 }
 0xca1   :  { %v1652_v61 = vadd.f32 %v896_v60, %v888_v59  ;;  %v1106_v59 = vld [vmem:[#allocation3 + $0x1d0] sm:$0xff]  ;;  %v1105_v60 = vld [vmem:[#allocation3 + $0x1c0] sm:$0xff] }
 0xca2   :  { %1120 = vmatpush.msrb.mxu1 %v1106_v59 }
 0xca3   :  { %1287 = vtanh.f32 %v1652_v61 }
 0xca4   :  { %1289 = vpow2.f32 %v1191_v63  ;;  %1121 = vmatpush.msrb.mxu1 %v1105_v60 }
 0xca9   :  { %v1288_v62 = vpop.eup %1287 }
 0xcaa   :  { %901 = vrot.lane.b32.xlu2 %v1288_v62, %s1361_s23  ;;  %v1290_v3 = vpop.eup %1289  ;;  %v1104_v62 = vld [vmem:[#allocation3 + $0x1b0] sm:$0xff] }
 0xcab   :  { %v856_v4 = vadd.f32 1.0, %v1290_v3  ;;  %1122 = vmatpush.msrb.mxu1 %v1104_v62 }
 0xcad   :  { %1291 = vrcp.f32 %v856_v4  ;;  %v883_v23 = vand.u32 2147483648, %v856_v4  ;;  %vm877_vm13 = vweird.f32 %v856_v4  ;;  %v881_v24 = vand.u32 2147483647, %v856_v4 }
 0xcaf   :  { %v884_v26 = vor.u32 1.1754944e-38, %v883_v23  ;;  %vm882_vm15 = vcmp.eq.f32.partialorder %v881_v24, 8.507059e+37 }
 0xcb3   :  { %v1292_v10 = vpop.eup %1291 }
 0xcb4   :  { %v873_v19 = vmul.f32 %v1292_v10, %v856_v4  ;;  %vm878_vm12 = vweird.f32 %v1292_v10 }
 0xcb5   :  { %vm879_vm14 = vmor %vm877_vm13, %vm878_vm12 }
 0xcb6   :  { %v874_v20 = vsub.f32 1.0, %v873_v19 }
 0xcb8   :  { %v875_v21 = vmul.f32 %v1292_v10, %v874_v20 }
 0xcba   :  { %v876_v22 = vadd.f32 %v1292_v10, %v875_v21 }
 0xcbc   :  { %v880_v25 = vsel %vm879_vm14, %v1292_v10, %v876_v22 }
 0xcbd   :  { %v885_v27 = vsel %vm882_vm15, %v884_v26, %v880_v25 }
 0xd04   :  { %v902_v28 = vpop.permute.xlu2 %901 }
 0xd05   :  { %v904_v29 = vmul.f32 %v902_v28, %v885_v27  ;;  %v1102_v27 = vld [vmem:[#allocation3 + $0x190] sm:$0xff]  ;;  %v1101_v28 = vld [vmem:[#allocation3 + $0x180] sm:$0xff] }
 0xd07   :  { %1192 = vmatmul.msk.f32.vlgmr.msrb.gmra.mxu2 %vm185_vm9, %v904_v29  ;;  %1193 = vmatmul.msk.f32.vlgmr.msrb.gmra.mxu3 %vm185_vm9, %v904_v29  ;;  %v1100_v29 = vld [vmem:[#allocation3 + $0x170] sm:$0xff] }
 0xd0f   :  { %1196 = vmatmul.msk.f32.vlgmr.msra.gmra.mxu2 %vm60_vm0, %v1008_v43  ;;  %vm1048_vm0 = vcmask 261120  }
 0xd8a   :  { %v947_v30 = vpop.f32.mrf.mxu3  ;;  %v927_v35 = vpop.f32.mrf.mxu2 }
 0xd8b   :  { %v1659_v31 = vadd.f32 %v947_v30, %v1630_v34  ;;  %v950_v36 = vadd.f32 %v927_v35, %v1635_v41  ;;  %v1099_v30 = vld [vmem:[#allocation3 + $0x160] sm:$0xff] }
 0xd8d   :  { %1293 = vtanh.f32 %v1659_v31  ;;  %v1194_v37 = vmul.f32 -1.442695, %v950_v36  ;;  %v1195_v56 = vmul.f32 -1.442695, %v1659_v31 }
 0xd8f   :  { %1295 = vpow2.f32 %v1194_v37 }
 0xd92   :  { %v1032_v18 = vpop.f32.mrf.mxu2 }
 0xd93   :  { %v1294_v32 = vpop.eup %1293  ;;  %v1033_v50 = vadd.f32 %v1206_v15, %v1032_v18 }
 0xd94   :  { %993 = vrot.lane.b32.xlu0 %v1294_v32, %s1361_s23  ;;  %v1207_v32 = vld [vmem:[%s1689_s3 + $0x1] ss:$0 sm:$0xff] }
 0xd95   :  { %v1296_v38 = vpop.eup %1295  ;;  %v1035_v52 = vmax.f32 %v1033_v50, 0.0 }
 0xd96   :  { %v958_v39 = vadd.f32 1.0, %v1296_v38 }
 0xd97   :  { %1197 = vmatmul.msk.f32.vlgmr.msra.gmra.mxu3 %vm1048_vm0, %v1035_v52 }
 0xd98   :  { %1297 = vrcp.f32 %v958_v39  ;;  %v971_v41 = vand.u32 2147483648, %v958_v39  ;;  %vm965_vm2 = vweird.f32 %v958_v39  ;;  %v969_v48 = vand.u32 2147483647, %v958_v39 }
 0xd9a   :  { %v972_v0 = vor.u32 1.1754944e-38, %v971_v41  ;;  %vm970_vm4 = vcmp.eq.f32.partialorder %v969_v48, 8.507059e+37 }
 0xd9e   :  { %v1298_v34 = vpop.eup %1297 }
 0xd9f   :  { %v961_v44 = vmul.f32 %v1298_v34, %v958_v39  ;;  %vm966_vm1 = vweird.f32 %v1298_v34  ;;  %v1208_v39 = vld [vmem:[%s1689_s3 + $0x2] ss:$0 sm:$0xff] }
 0xda0   :  { %vm967_vm3 = vmor %vm965_vm2, %vm966_vm1 }
 0xda1   :  { %v962_v45 = vsub.f32 1.0, %v961_v44 }
 0xda3   :  { %v963_v46 = vmul.f32 %v1298_v34, %v962_v45 }
 0xda5   :  { %v964_v47 = vadd.f32 %v1298_v34, %v963_v46 }
 0xda7   :  { %v968_v49 = vsel %vm967_vm3, %v1298_v34, %v964_v47 }
 0xda8   :  { %v973_v2 = vsel %vm970_vm4, %v972_v0, %v968_v49 }
 0xda9   :  { %v991_v53 = vmul.f32 %v973_v2, %v1652_v61  ;;  %v1103_v61 = vld [vmem:[#allocation3 + $0x1a0] sm:$0xff] }
 0xdaa   :  { %1123 = vmatpush.msrb.mxu1 %v1103_v61 }
 0xdac   :  { %1124 = vmatpush.msrb.mxu1 %v1102_v27 }
 0xdae   :  { %1125 = vmatpush.msrb.mxu1 %v1101_v28 }
 0xdb0   :  { %1126 = vmatpush.msrb.mxu1 %v1100_v29 }
 0xdb2   :  { %1127 = vmatpush.msrb.mxu1 %v1099_v30 }
 0xe06   :  { %v994_v1 = vpop.permute.xlu0 %993 }
 0xe07   :  { %v996_v5 = vmul.f32 %v994_v1, %v973_v2 }
 0xe09   :  { %998 = vrot.lane.b32.xlu1 %v996_v5, %s1361_s23 }
 0xe1a   :  { %v1069_v31 = vpop.f32.mrf.mxu3 }
 0xe7b   :  { %v999_v54 = vpop.permute.xlu1 %998 }
 0xe7c   :  { %v1001_v33 = vadd.f32 %v999_v54, %v991_v53 }
 0xe7e   :  { %1299 = vtanh.f32 %v1001_v33 }
 0xe7f   :  { %1301 = vpow2.f32 %v1195_v56 }
 0xe84   :  { %v1300_v55 = vpop.eup %1299 }
 0xe85   :  { %1004 = vrot.lane.b32.xlu2 %v1300_v55, %s1361_s23  ;;  %v1302_v57 = vpop.eup %1301 }
 0xe86   :  { %v959_v40 = vadd.f32 1.0, %v1302_v57 }
 0xe88   :  { %1303 = vrcp.f32 %v959_v40  ;;  %v986_v20 = vand.u32 2147483648, %v959_v40  ;;  %vm980_vm6 = vweird.f32 %v959_v40  ;;  %v984_v21 = vand.u32 2147483647, %v959_v40 }
 0xe8a   :  { %v987_v23 = vor.u32 1.1754944e-38, %v986_v20  ;;  %vm985_vm8 = vcmp.eq.f32.partialorder %v984_v21, 8.507059e+37 }
 0xe8e   :  { %v1304_v63 = vpop.eup %1303 }
 0xe8f   :  { %v976_v3 = vmul.f32 %v1304_v63, %v959_v40  ;;  %vm981_vm5 = vweird.f32 %v1304_v63 }
 0xe90   :  { %vm982_vm7 = vmor %vm980_vm6, %vm981_vm5 }
 0xe91   :  { %v977_v4 = vsub.f32 1.0, %v976_v3 }
 0xe93   :  { %v978_v10 = vmul.f32 %v1304_v63, %v977_v4 }
 0xe95   :  { %v979_v19 = vadd.f32 %v1304_v63, %v978_v10 }
 0xe97   :  { %v983_v22 = vsel %vm982_vm7, %v1304_v63, %v979_v19 }
 0xe98   :  { %v988_v24 = vsel %vm985_vm8, %v987_v23, %v983_v22 }
 0xedf   :  { %v1005_v25 = vpop.permute.xlu2 %1004 }
 0xee0   :  { %v1007_v26 = vmul.f32 %v1005_v25, %v988_v24 }
 0xee2   :  { %1198 = vmatmul.msk.f32.vlgmr.msrb.gmra.mxu0 %vm185_vm9, %v1007_v26 }
 0xf5f   :  { %v1092_v35 = vpop.f32.mrf.mxu0 }
 0xf60   :  { %v1093_v36 = vadd.f32 %v1092_v35, %v1069_v31 }
 0xf62   :  { %v1097_v37 = vadd.f32 %v1207_v32, %v1093_v36 }
 0xf64   :  { %v1098_v38 = vmax.f32 %v1097_v37, 0.0 }
 0xf66   :  { %1199 = vmatmul.msk.f32.vlgmr.msrb.gmra.mxu1 %vm185_vm9, %v1098_v38 }
 0xfe3   :  { %v1129_v42 = vpop.f32.mrf.mxu1 }
 0xfe4   :  { %v1130_v43 = vadd.f32 %v1208_v39, %v1129_v42 }
 0xfe6   :  { %1132 = vst [vmem:[#allocation6] sm:$0xff] %v1130_v43 }
 0xfe7   :  { %1143 = dma.vmem_to_hbm [thread:$0]  %s1139_s19, 128, %s1141_s2, [#allocation5]  }
 0xfe8   :  { %1355 = dma.done.wait [#allocation5], 128  }
 0xfe9   :  { %1356 = vsyncadd [#allocation5], 4294967168 }
 0xfea   :  { %1148 = vsyncpa [#allocation4], 1 }
 0xfeb   :  { %1149 = vsyncpa [#allocation5], 1 }

</bundles_post_ra>
